<compile_context>
chip_gen: v7x
topology: tpu7x:2x2x1
jax: 0.10.0
libtpu: 0.0.40
codegen_flags: <defaults>
</compile_context>

<pallas_src>
import jax
import jax.numpy as jnp
from jax import lax
from jax.experimental import pallas as pl
from jax.experimental.pallas import tpu as pltpu


# ----------------------------------------------------------------------------
# small Python-int helpers (wrapper-side only)
# ----------------------------------------------------------------------------
def _cdiv(a, b):
    return -(-a // b)


def _ru(x, m):
    return _cdiv(x, m) * m


def _vmem_block_bytes(rows, cols, dtype):
    """VMEM footprint of one (rows, cols) buffer with (sublane, 128) tiling."""
    item = jnp.dtype(dtype).itemsize
    sub = 8 * max(1, 4 // max(item, 1))          # f32 -> 8, bf16 -> 16, int8 -> 32
    return _ru(max(rows, 1), sub) * _ru(max(cols, 1), 128) * item


def _vmem_capacity_bytes():
    try:
        cap = int(pltpu.get_tpu_info().vmem_capacity_bytes)
        if cap > 0:
            return cap
    except Exception:
        pass
    return 64 * 2 ** 20                          # conservative (v7x-sized) fallback


def _plan_tiles(M, N, D, E, k1p, k2p, dtypes, budget):
    """Pick row tiles so the three streams finish in the same number of steps
    while the (lane-padded, double-buffered) VMEM footprint stays under budget."""
    dt_t, dt_p, dt_l1, dt_a1, dt_l2, dt_a2 = dtypes
    s_max = max(1, _cdiv(M, 8), _cdiv(D, 8), _cdiv(E, 8))

    def tiles(s):
        return (_ru(_cdiv(M, s), 8), _ru(_cdiv(D, s), 8), _ru(_cdiv(E, s), 8))

    def footprint(s):
        tr, td, te = tiles(s)
        b = 0
        # double-buffered streamed tiles
        b += 2 * (_vmem_block_bytes(tr, N, dt_t) + _vmem_block_bytes(tr, N, dt_p))
        b += 2 * _vmem_block_bytes(td, D, dt_l1) + 2 * _vmem_block_bytes(te, E, dt_l2)
        b += 2 * _vmem_block_bytes(td, k1p, dt_a1) + 2 * _vmem_block_bytes(te, k2p, dt_a2)
        # resident alphas (budgeted at 2 buffers even if single-buffering succeeds)
        b += 2 * _vmem_block_bytes(D, k1p, dt_a1) + 2 * _vmem_block_bytes(E, k2p, dt_a2)
        # block-shaped f32 accumulators + per-core output blocks
        b += (_vmem_block_bytes(tr, N, jnp.float32)
              + _vmem_block_bytes(td, k1p, jnp.float32)
              + _vmem_block_bytes(te, k2p, jnp.float32))
        b += 2 * 8 * 128 * 4
        return b

    s = 1
    while s < s_max and footprint(s) > budget:
        s += 1
    tr, td, te = tiles(s)
    return tr, td, te, footprint(s)


# ----------------------------------------------------------------------------
# kernel
# ----------------------------------------------------------------------------
def _make_kernel(spc, tr, td, te, nt_f, nt_p, nt_d, m_rows, d_rows, e_rows):
    """spc: inner steps per core; nt_*: valid blocks per stream; *_rows: true extents."""
    mask_f = (nt_f * tr != m_rows)   # compile-time: only mask ragged tails
    mask_p = (nt_p * td != d_rows)
    mask_d = (nt_d * te != e_rows)

    def kernel(lam_ref,               # SMEM (2,)        [lambda1, lambda2]
               tgt_ref, prd_ref,      # VMEM (tr, N)     target / prediction row block
               pir_ref,               # VMEM (td, D)     pir_lap row block
               a1m_ref,               # VMEM (D, K1p)    alpha1, resident (matmul RHS)
               a1r_ref,               # VMEM (td, K1p)   alpha1 matching row block
               dis_ref,               # VMEM (te, E)     dis_lap row block
               a2m_ref,               # VMEM (E, K2p)    alpha2, resident
               a2r_ref,               # VMEM (te, K2p)   alpha2 matching row block
               out_ref,               # VMEM (1, 8, 128) per-core partial loss
               accf_ref, accp_ref, accd_ref):   # VMEM f32 accumulators
        c = pl.program_id(0)
        i = pl.program_id(1)
        gstep = c * spc + i           # global row-block index handled by this core

        @pl.when(i == 0)
        def _init():
            accf_ref[...] = jnp.zeros_like(accf_ref)
            accp_ref[...] = jnp.zeros_like(accp_ref)
            accd_ref[...] = jnp.zeros_like(accd_ref)

        # ||target - prediction||_F^2 over this row block (VPU only).
        @pl.when(gstep < nt_f)
        def _frob():
            diff = (tgt_ref[...].astype(jnp.float32)
                    - prd_ref[...].astype(jnp.float32))
            sq = diff * diff
            if mask_f:
                rows = gstep * tr + lax.broadcasted_iota(jnp.int32, sq.shape, 0)
                sq = jnp.where(rows < m_rows, sq, 0.0)
            accf_ref[...] += sq

        # trace(a1^T L a1) partial: a1[rows] * (L[rows, :] @ a1).  One MXU matmul.
        @pl.when(gstep < nt_p)
        def _pir():
            la = jnp.dot(pir_ref[...], a1m_ref[...],
                         preferred_element_type=jnp.float32)
            prod = a1r_ref[...].astype(jnp.float32) * la
            if mask_p:
                rows = gstep * td + lax.broadcasted_iota(jnp.int32, prod.shape, 0)
                prod = jnp.where(rows < d_rows, prod, 0.0)
            accp_ref[...] += prod

        # trace(a2^T L a2) partial.
        @pl.when(gstep < nt_d)
        def _dis():
            la = jnp.dot(dis_ref[...], a2m_ref[...],
                         preferred_element_type=jnp.float32)
            prod = a2r_ref[...].astype(jnp.float32) * la
            if mask_d:
                rows = gstep * te + lax.broadcasted_iota(jnp.int32, prod.shape, 0)
                prod = jnp.where(rows < e_rows, prod, 0.0)
            accd_ref[...] += prod

        # Single cross-lane reduce + lambda combine per core.
        @pl.when(i == spc - 1)
        def _finalize():
            part = (jnp.sum(accf_ref[...])
                    + lam_ref[0] * jnp.sum(accp_ref[...])
                    + lam_ref[1] * jnp.sum(accd_ref[...]))
            out_ref[...] = jnp.full(out_ref.shape, part, jnp.float32)

    return kernel


# ----------------------------------------------------------------------------
# wrapper
# ----------------------------------------------------------------------------
def myloss(target, prediction, pir_lap, dis_lap, alpha1, alpha2,
           lambda1, lambda2):
    """Pallas TPU implementation of Myloss.forward. Returns a scalar f32."""
    # --- views only: contiguous reshapes are free, no padding of big operands ---
    t2 = target if target.ndim == 2 else target.reshape(-1, target.shape[-1])
    p2 = prediction if prediction.ndim == 2 else prediction.reshape(-1, prediction.shape[-1])
    M, N = int(t2.shape[0]), int(t2.shape[1])
    D = int(pir_lap.shape[0])
    E = int(dis_lap.shape[0])
    K1, K2 = int(alpha1.shape[1]), int(alpha2.shape[1])
    k1p, k2p = _ru(max(K1, 1), 128), _ru(max(K2, 1), 128)

    # Lane-dense alphas: pad K up to a multiple of 128 (tiny copy, trace-neutral).
    a1 = alpha1 if k1p == K1 else jnp.pad(alpha1, ((0, 0), (0, k1p - K1)))
    a2 = alpha2 if k2p == K2 else jnp.pad(alpha2, ((0, 0), (0, k2p - K2)))

    lam = jnp.asarray([lambda1, lambda2], dtype=jnp.float32)

    # --- per-generation VMEM budget and balanced tiling ---
    capacity = _vmem_capacity_bytes()                 # 128 MiB v5e/v6e, 64 MiB v7x
    budget = min(45 * 2 ** 20, int(0.70 * capacity))  # double-buffered footprint cap
    dtypes = (t2.dtype, p2.dtype, pir_lap.dtype, a1.dtype, dis_lap.dtype, a2.dtype)
    tr, td, te, footprint = _plan_tiles(M, N, D, E, k1p, k2p, dtypes, budget)
    nt_f, nt_p, nt_d = _cdiv(M, tr), _cdiv(D, td), _cdiv(E, te)
    num_steps = max(nt_f, nt_p, nt_d, 1)

    n_cores = 2                        # v7x has 2 TCs; the extra axis is ~free on 1-TC chips
    spc = _cdiv(num_steps, n_cores)    # inner ("arbitrary") steps per core

    vmem_limit = int(min(int(0.90 * capacity),
                         max(32 * 2 ** 20, footprint + 8 * 2 ** 20)))

    kernel = _make_kernel(spc, tr, td, te, nt_f, nt_p, nt_d, M, D, E)

    # Clamped index maps: steps past a stream's last block re-use it (re-DMA is
    # elided for identical indices); the pl.when guards + masking keep it inert.
    def gidx(nt):
        return lambda c, i: (jnp.minimum(c * spc + i, nt - 1), 0)

    nbytes = lambda x: int(x.size) * jnp.dtype(x.dtype).itemsize
    bytes_accessed = (nbytes(t2) + nbytes(p2) + nbytes(pir_lap) + nbytes(dis_lap)
                      + 2 * nbytes(a1) + 2 * nbytes(a2)
                      + lam.size * 4 + n_cores * 8 * 128 * 4)
    flops = int(3 * M * N
                + 2 * D * D * k1p + 2 * D * k1p
                + 2 * E * E * k2p + 2 * E * k2p)

    def run(resident_mode):
        rkw = {} if resident_mode is None else {"pipeline_mode": resident_mode}
        in_specs = [
            pl.BlockSpec(memory_space=pltpu.MemorySpace.SMEM),        # lam
            pl.BlockSpec((tr, N), gidx(nt_f)),                        # target rows
            pl.BlockSpec((tr, N), gidx(nt_f)),                        # prediction rows
            pl.BlockSpec((td, D), gidx(nt_p)),                        # pir_lap row block
            pl.BlockSpec((D, k1p), lambda c, i: (0, 0), **rkw),       # alpha1 (resident)
            pl.BlockSpec((td, k1p), gidx(nt_p)),                      # alpha1 row block
            pl.BlockSpec((te, E), gidx(nt_d)),                        # dis_lap row block
            pl.BlockSpec((E, k2p), lambda c, i: (0, 0), **rkw),       # alpha2 (resident)
            pl.BlockSpec((te, k2p), gidx(nt_d)),                      # alpha2 row block
        ]
        out_spec = pl.BlockSpec((1, 8, 128), lambda c, i: (c, 0, 0))
        return pl.pallas_call(
            kernel,
            out_shape=jax.ShapeDtypeStruct((n_cores, 8, 128), jnp.float32),
            grid=(n_cores, spc),
            in_specs=in_specs,
            out_specs=out_spec,
            scratch_shapes=[pltpu.VMEM((tr, N), jnp.float32),
                            pltpu.VMEM((td, k1p), jnp.float32),
                            pltpu.VMEM((te, k2p), jnp.float32)],
            compiler_params=pltpu.CompilerParams(
                dimension_semantics=("parallel", "arbitrary"),
                vmem_limit_bytes=vmem_limit),
            cost_estimate=pl.CostEstimate(flops=flops, transcendentals=0,
                                          bytes_accessed=int(bytes_accessed)),
        )(lam, t2, p2, pir_lap, a1, a1, dis_lap, a2, a2)

    try:
        out = run(pl.Buffered(1))      # single-buffer the resident alphas
    except Exception:
        out = run(None)                # fallback: default double buffering

    return out[:, 0, 0].sum()          # add the per-core partial losses


# ----------------------------------------------------------------------------
# reference + test harness
# ----------------------------------------------------------------------------
def _reference(target, prediction, pir_lap, dis_lap, alpha1, alpha2,
               lambda1, lambda2):
    loss_ls = jnp.sum((target - prediction) ** 2)
    pir_reg = jnp.trace(alpha1.T @ pir_lap @ alpha1)
    dis_reg = jnp.trace(alpha2.T @ dis_lap @ alpha2)
    return loss_ls + lambda1 * pir_reg + lambda2 * dis_reg


if __name__ == "__main__":
    key = jax.random.PRNGKey(0)
    k1, k2, k3, k4, k5, k6 = jax.random.split(key, 6)

    M, N = 8, 16        # target / prediction (Y_train, score)
    D, K1 = 8, 4        # pir_lap (D, D), alpha1 (D, K1)
    E, K2 = 16, 4       # dis_lap (E, E), alpha2 (E, K2)

    target = jax.random.normal(k1, (M, N), dtype=jnp.float32)
    prediction = jax.random.normal(k2, (M, N), dtype=jnp.float32)

    # Deterministic symmetric "Laplacian-like" matrices.
    a = jax.random.normal(k3, (D, D), dtype=jnp.float32)
    pir_lap = a @ a.T
    b = jax.random.normal(k4, (E, E), dtype=jnp.float32)
    dis_lap = b @ b.T

    alpha1 = jax.random.normal(k5, (D, K1), dtype=jnp.float32)
    alpha2 = jax.random.normal(k6, (E, K2), dtype=jnp.float32)

    lambda1, lambda2 = 0.5, 0.25   # sizes.lambda1 / sizes.lambda2

    loss = myloss(target, prediction, pir_lap, dis_lap, alpha1, alpha2,
                  lambda1, lambda2)
    loss = jax.block_until_ready(loss)

    ref = _reference(target, prediction, pir_lap, dis_lap, alpha1, alpha2,
                     lambda1, lambda2)
    assert jnp.allclose(loss, ref, rtol=1e-5, atol=1e-3), (loss, ref)

    print("KERNEL_OK")
</pallas_src>

<mosaic_0001>
module attributes {stable_mosaic.version = 11 : i64} {
  func.func @kernel(%arg0: i32, %arg1: i32, %arg2: memref<2xf32, #tpu.memory_space<smem>>, %arg3: memref<8x16xf32, #tpu.memory_space<vmem>>, %arg4: memref<8x16xf32, #tpu.memory_space<vmem>>, %arg5: memref<8x8xf32, #tpu.memory_space<vmem>>, %arg6: memref<8x128xf32, #tpu.memory_space<vmem>>, %arg7: memref<8x128xf32, #tpu.memory_space<vmem>>, %arg8: memref<16x16xf32, #tpu.memory_space<vmem>>, %arg9: memref<16x128xf32, #tpu.memory_space<vmem>>, %arg10: memref<16x128xf32, #tpu.memory_space<vmem>>, %arg11: memref<1x8x128xf32, #tpu.memory_space<vmem>>, %arg12: memref<8x16xf32, #tpu.memory_space<vmem>>, %arg13: memref<8x128xf32, #tpu.memory_space<vmem>>, %arg14: memref<16x128xf32, #tpu.memory_space<vmem>>) attributes {dimension_semantics = [#tpu.dimension_semantics<parallel>, #tpu.dimension_semantics<arbitrary>], iteration_bounds = array<i64: 2, 1>, scalar_prefetch = 0 : i64, scratch_operands = 3 : i64, tpu.core_type = #tpu.core_type<tc>, window_params = [{transform_indices = @transform_0, window_bounds = array<i64: 2>}, {transform_indices = @transform_1, window_bounds = array<i64: 8, 16>}, {transform_indices = @transform_2, window_bounds = array<i64: 8, 16>}, {transform_indices = @transform_3, window_bounds = array<i64: 8, 8>}, {pipeline_mode = #tpu.pipeline_mode<synchronous>, transform_indices = @transform_4, window_bounds = array<i64: 8, 128>}, {transform_indices = @transform_5, window_bounds = array<i64: 8, 128>}, {transform_indices = @transform_6, window_bounds = array<i64: 16, 16>}, {pipeline_mode = #tpu.pipeline_mode<synchronous>, transform_indices = @transform_7, window_bounds = array<i64: 16, 128>}, {transform_indices = @transform_8, window_bounds = array<i64: 16, 128>}, {transform_indices = @transform_9, window_bounds = array<i64: 1, 8, 128>}]} {
    %c1_i32 = arith.constant 1 : i32
    %0 = arith.muli %arg0, %c1_i32 : i32
    %1 = arith.addi %0, %arg1 : i32
    %c0_i32 = arith.constant 0 : i32
    %2 = arith.cmpi eq, %arg1, %c0_i32 : i32
    %3 = arith.extui %2 : i1 to i32
    %c0_i32_0 = arith.constant 0 : i32
    %4 = arith.cmpi ne, %3, %c0_i32_0 : i32
    scf.if %4 {
      %cst = arith.constant 0.000000e+00 : f32
      %17 = vector.broadcast %cst : f32 to vector<8x16xf32>
      %c0 = arith.constant 0 : index
      %c0_9 = arith.constant 0 : index
      %18 = vector.load %arg12[%c0, %c0_9] : memref<8x16xf32, #tpu.memory_space<vmem>>, vector<8x16xf32>
      tpu.vector_store %arg12[%c0, %c0_9], %17 {strides = array<i32>} : memref<8x16xf32, #tpu.memory_space<vmem>>, vector<8x16xf32>,
      %cst_10 = arith.constant 0.000000e+00 : f32
      %19 = vector.broadcast %cst_10 : f32 to vector<8x128xf32>
      %c0_11 = arith.constant 0 : index
      %c0_12 = arith.constant 0 : index
      %20 = vector.load %arg13[%c0_11, %c0_12] : memref<8x128xf32, #tpu.memory_space<vmem>>, vector<8x128xf32>
      tpu.vector_store %arg13[%c0_11, %c0_12], %19 {strides = array<i32>} : memref<8x128xf32, #tpu.memory_space<vmem>>, vector<8x128xf32>,
      %cst_13 = arith.constant 0.000000e+00 : f32
      %21 = vector.broadcast %cst_13 : f32 to vector<16x128xf32>
      %c0_14 = arith.constant 0 : index
      %c0_15 = arith.constant 0 : index
      %22 = vector.load %arg14[%c0_14, %c0_15] : memref<16x128xf32, #tpu.memory_space<vmem>>, vector<16x128xf32>
      tpu.vector_store %arg14[%c0_14, %c0_15], %21 {strides = array<i32>} : memref<16x128xf32, #tpu.memory_space<vmem>>, vector<16x128xf32>,
    } else {
    }
    %c1_i32_1 = arith.constant 1 : i32
    %5 = arith.cmpi slt, %1, %c1_i32_1 : i32
    %6 = arith.extui %5 : i1 to i32
    %c0_i32_2 = arith.constant 0 : i32
    %7 = arith.cmpi ne, %6, %c0_i32_2 : i32
    scf.if %7 {
      %c0 = arith.constant 0 : index
      %c0_9 = arith.constant 0 : index
      %17 = vector.load %arg3[%c0, %c0_9] : memref<8x16xf32, #tpu.memory_space<vmem>>, vector<8x16xf32>
      %c0_10 = arith.constant 0 : index
      %c0_11 = arith.constant 0 : index
      %18 = vector.load %arg4[%c0_10, %c0_11] : memref<8x16xf32, #tpu.memory_space<vmem>>, vector<8x16xf32>
      %19 = arith.subf %17, %18 : vector<8x16xf32>
      %20 = arith.mulf %19, %19 : vector<8x16xf32>
      %c0_12 = arith.constant 0 : index
      %c0_13 = arith.constant 0 : index
      %21 = vector.load %arg12[%c0_12, %c0_13] : memref<8x16xf32, #tpu.memory_space<vmem>>, vector<8x16xf32>
      %22 = arith.addf %21, %20 : vector<8x16xf32>
      %c0_14 = arith.constant 0 : index
      %c0_15 = arith.constant 0 : index
      %23 = vector.load %arg12[%c0_14, %c0_15] : memref<8x16xf32, #tpu.memory_space<vmem>>, vector<8x16xf32>
      tpu.vector_store %arg12[%c0_14, %c0_15], %22 {strides = array<i32>} : memref<8x16xf32, #tpu.memory_space<vmem>>, vector<8x16xf32>,
    } else {
    }
    %c1_i32_3 = arith.constant 1 : i32
    %8 = arith.cmpi slt, %1, %c1_i32_3 : i32
    %9 = arith.extui %8 : i1 to i32
    %c0_i32_4 = arith.constant 0 : i32
    %10 = arith.cmpi ne, %9, %c0_i32_4 : i32
    scf.if %10 {
      %c0 = arith.constant 0 : index
      %c0_9 = arith.constant 0 : index
      %17 = vector.load %arg5[%c0, %c0_9] : memref<8x8xf32, #tpu.memory_space<vmem>>, vector<8x8xf32>
      %c0_10 = arith.constant 0 : index
      %c0_11 = arith.constant 0 : index
      %18 = vector.load %arg6[%c0_10, %c0_11] : memref<8x128xf32, #tpu.memory_space<vmem>>, vector<8x128xf32>
      %cst = arith.constant dense<0.000000e+00> : vector<8x128xf32>
      %19 = tpu.matmul %17, %18, %cst {dimension_numbers = #tpu.dot_dimension_numbers<[1], [0], [0], [1], [0, 0, 1, 1], [], []>} : vector<8x8xf32>, vector<8x128xf32>, vector<8x128xf32> -> vector<8x128xf32>
      %c0_12 = arith.constant 0 : index
      %c0_13 = arith.constant 0 : index
      %20 = vector.load %arg7[%c0_12, %c0_13] : memref<8x128xf32, #tpu.memory_space<vmem>>, vector<8x128xf32>
      %21 = arith.mulf %20, %19 : vector<8x128xf32>
      %c0_14 = arith.constant 0 : index
      %c0_15 = arith.constant 0 : index
      %22 = vector.load %arg13[%c0_14, %c0_15] : memref<8x128xf32, #tpu.memory_space<vmem>>, vector<8x128xf32>
      %23 = arith.addf %22, %21 : vector<8x128xf32>
      %c0_16 = arith.constant 0 : index
      %c0_17 = arith.constant 0 : index
      %24 = vector.load %arg13[%c0_16, %c0_17] : memref<8x128xf32, #tpu.memory_space<vmem>>, vector<8x128xf32>
      tpu.vector_store %arg13[%c0_16, %c0_17], %23 {strides = array<i32>} : memref<8x128xf32, #tpu.memory_space<vmem>>, vector<8x128xf32>,
    } else {
    }
    %c1_i32_5 = arith.constant 1 : i32
    %11 = arith.cmpi slt, %1, %c1_i32_5 : i32
    %12 = arith.extui %11 : i1 to i32
    %c0_i32_6 = arith.constant 0 : i32
    %13 = arith.cmpi ne, %12, %c0_i32_6 : i32
    scf.if %13 {
      %c0 = arith.constant 0 : index
      %c0_9 = arith.constant 0 : index
      %17 = vector.load %arg8[%c0, %c0_9] : memref<16x16xf32, #tpu.memory_space<vmem>>, vector<16x16xf32>
      %c0_10 = arith.constant 0 : index
      %c0_11 = arith.constant 0 : index
      %18 = vector.load %arg9[%c0_10, %c0_11] : memref<16x128xf32, #tpu.memory_space<vmem>>, vector<16x128xf32>
      %cst = arith.constant dense<0.000000e+00> : vector<16x128xf32>
      %19 = tpu.matmul %17, %18, %cst {dimension_numbers = #tpu.dot_dimension_numbers<[1], [0], [0], [1], [0, 0, 1, 1], [], []>} : vector<16x16xf32>, vector<16x128xf32>, vector<16x128xf32> -> vector<16x128xf32>
      %c0_12 = arith.constant 0 : index
      %c0_13 = arith.constant 0 : index
      %20 = vector.load %arg10[%c0_12, %c0_13] : memref<16x128xf32, #tpu.memory_space<vmem>>, vector<16x128xf32>
      %21 = arith.mulf %20, %19 : vector<16x128xf32>
      %c0_14 = arith.constant 0 : index
      %c0_15 = arith.constant 0 : index
      %22 = vector.load %arg14[%c0_14, %c0_15] : memref<16x128xf32, #tpu.memory_space<vmem>>, vector<16x128xf32>
      %23 = arith.addf %22, %21 : vector<16x128xf32>
      %c0_16 = arith.constant 0 : index
      %c0_17 = arith.constant 0 : index
      %24 = vector.load %arg14[%c0_16, %c0_17] : memref<16x128xf32, #tpu.memory_space<vmem>>, vector<16x128xf32>
      tpu.vector_store %arg14[%c0_16, %c0_17], %23 {strides = array<i32>} : memref<16x128xf32, #tpu.memory_space<vmem>>, vector<16x128xf32>,
    } else {
    }
    %c0_i32_7 = arith.constant 0 : i32
    %14 = arith.cmpi eq, %arg1, %c0_i32_7 : i32
    %15 = arith.extui %14 : i1 to i32
    %c0_i32_8 = arith.constant 0 : i32
    %16 = arith.cmpi ne, %15, %c0_i32_8 : i32
    scf.if %16 {
      %c0 = arith.constant 0 : index
      %c0_9 = arith.constant 0 : index
      %17 = vector.load %arg12[%c0, %c0_9] : memref<8x16xf32, #tpu.memory_space<vmem>>, vector<8x16xf32>
      %18 = vector.shape_cast %17 : vector<8x16xf32> to vector<1x8x16xf32>
      %cst = arith.constant dense<0.000000e+00> : vector<1xf32>
      %19 = vector.multi_reduction <add>, %18, %cst [1, 2] : vector<1x8x16xf32> to vector<1xf32>
      %20 = vector.shape_cast %19 : vector<1xf32> to vector<1x1x1xf32>
      %21 = vector.extract %20[0, 0, 0] : f32 from vector<1x1x1xf32>
      %c0_10 = arith.constant 0 : index
      %22 = memref.load %arg2[%c0_10] : memref<2xf32, #tpu.memory_space<smem>>
      %c0_11 = arith.constant 0 : index
      %c0_12 = arith.constant 0 : index
      %23 = vector.load %arg13[%c0_11, %c0_12] : memref<8x128xf32, #tpu.memory_space<vmem>>, vector<8x128xf32>
      %24 = vector.shape_cast %23 : vector<8x128xf32> to vector<1x8x128xf32>
      %cst_13 = arith.constant dense<0.000000e+00> : vector<1xf32>
      %25 = vector.multi_reduction <add>, %24, %cst_13 [1, 2] : vector<1x8x128xf32> to vector<1xf32>
      %26 = vector.shape_cast %25 : vector<1xf32> to vector<1x1x1xf32>
      %27 = vector.extract %26[0, 0, 0] : f32 from vector<1x1x1xf32>
      %28 = arith.mulf %22, %27 : f32
      %29 = arith.addf %21, %28 : f32
      %c1 = arith.constant 1 : index
      %30 = memref.load %arg2[%c1] : memref<2xf32, #tpu.memory_space<smem>>
      %c0_14 = arith.constant 0 : index
      %c0_15 = arith.constant 0 : index
      %31 = vector.load %arg14[%c0_14, %c0_15] : memref<16x128xf32, #tpu.memory_space<vmem>>, vector<16x128xf32>
      %32 = vector.shape_cast %31 : vector<16x128xf32> to vector<1x16x128xf32>
      %cst_16 = arith.constant dense<0.000000e+00> : vector<1xf32>
      %33 = vector.multi_reduction <add>, %32, %cst_16 [1, 2] : vector<1x16x128xf32> to vector<1xf32>
      %34 = vector.shape_cast %33 : vector<1xf32> to vector<1x1x1xf32>
      %35 = vector.extract %34[0, 0, 0] : f32 from vector<1x1x1xf32>
      %36 = arith.mulf %30, %35 : f32
      %37 = arith.addf %29, %36 : f32
      %38 = vector.broadcast %37 : f32 to vector<1x8x128xf32>
      %c0_17 = arith.constant 0 : index
      %c0_18 = arith.constant 0 : index
      %c0_19 = arith.constant 0 : index
      %39 = vector.load %arg11[%c0_17, %c0_18, %c0_19] : memref<1x8x128xf32, #tpu.memory_space<vmem>>, vector<1x8x128xf32>
      tpu.vector_store %arg11[%c0_17, %c0_18, %c0_19], %38 {strides = array<i32>} : memref<1x8x128xf32, #tpu.memory_space<vmem>>, vector<1x8x128xf32>,
    } else {
    }
    return
  }
  func.func @transform_0(%arg0: i32, %arg1: i32) -> i32 {
    %c0_i32 = arith.constant 0 : i32
    %c0_i32_0 = arith.constant 0 : i32
    return %c0_i32 : i32
  }
  func.func @transform_1(%arg0: i32, %arg1: i32) -> (i32, i32) {
    %c1_i32 = arith.constant 1 : i32
    %0 = arith.muli %arg0, %c1_i32 : i32
    %1 = arith.addi %0, %arg1 : i32
    %c0_i32 = arith.constant 0 : i32
    %2 = arith.minsi %1, %c0_i32 : i32
    %c0_i32_0 = arith.constant 0 : i32
    %c0_i32_1 = arith.constant 0 : i32
    return %2, %c0_i32_0 : i32, i32
  }
  func.func @transform_2(%arg0: i32, %arg1: i32) -> (i32, i32) {
    %c1_i32 = arith.constant 1 : i32
    %0 = arith.muli %arg0, %c1_i32 : i32
    %1 = arith.addi %0, %arg1 : i32
    %c0_i32 = arith.constant 0 : i32
    %2 = arith.minsi %1, %c0_i32 : i32
    %c0_i32_0 = arith.constant 0 : i32
    %c0_i32_1 = arith.constant 0 : i32
    return %2, %c0_i32_0 : i32, i32
  }
  func.func @transform_3(%arg0: i32, %arg1: i32) -> (i32, i32) {
    %c1_i32 = arith.constant 1 : i32
    %0 = arith.muli %arg0, %c1_i32 : i32
    %1 = arith.addi %0, %arg1 : i32
    %c0_i32 = arith.constant 0 : i32
    %2 = arith.minsi %1, %c0_i32 : i32
    %c0_i32_0 = arith.constant 0 : i32
    %c0_i32_1 = arith.constant 0 : i32
    return %2, %c0_i32_0 : i32, i32
  }
  func.func @transform_4(%arg0: i32, %arg1: i32) -> (i32, i32) {
    %c0_i32 = arith.constant 0 : i32
    %c0_i32_0 = arith.constant 0 : i32
    %c0_i32_1 = arith.constant 0 : i32
    return %c0_i32, %c0_i32_0 : i32, i32
  }
  func.func @transform_5(%arg0: i32, %arg1: i32) -> (i32, i32) {
    %c1_i32 = arith.constant 1 : i32
    %0 = arith.muli %arg0, %c1_i32 : i32
    %1 = arith.addi %0, %arg1 : i32
    %c0_i32 = arith.constant 0 : i32
    %2 = arith.minsi %1, %c0_i32 : i32
    %c0_i32_0 = arith.constant 0 : i32
    %c0_i32_1 = arith.constant 0 : i32
    return %2, %c0_i32_0 : i32, i32
  }
  func.func @transform_6(%arg0: i32, %arg1: i32) -> (i32, i32) {
    %c1_i32 = arith.constant 1 : i32
    %0 = arith.muli %arg0, %c1_i32 : i32
    %1 = arith.addi %0, %arg1 : i32
    %c0_i32 = arith.constant 0 : i32
    %2 = arith.minsi %1, %c0_i32 : i32
    %c0_i32_0 = arith.constant 0 : i32
    %c0_i32_1 = arith.constant 0 : i32
    return %2, %c0_i32_0 : i32, i32
  }
  func.func @transform_7(%arg0: i32, %arg1: i32) -> (i32, i32) {
    %c0_i32 = arith.constant 0 : i32
    %c0_i32_0 = arith.constant 0 : i32
    %c0_i32_1 = arith.constant 0 : i32
    return %c0_i32, %c0_i32_0 : i32, i32
  }
  func.func @transform_8(%arg0: i32, %arg1: i32) -> (i32, i32) {
    %c1_i32 = arith.constant 1 : i32
    %0 = arith.muli %arg0, %c1_i32 : i32
    %1 = arith.addi %0, %arg1 : i32
    %c0_i32 = arith.constant 0 : i32
    %2 = arith.minsi %1, %c0_i32 : i32
    %c0_i32_0 = arith.constant 0 : i32
    %c0_i32_1 = arith.constant 0 : i32
    return %2, %c0_i32_0 : i32, i32
  }
  func.func @transform_9(%arg0: i32, %arg1: i32) -> (i32, i32, i32) {
    %c0_i32 = arith.constant 0 : i32
    %c0_i32_0 = arith.constant 0 : i32
    %c0_i32_1 = arith.constant 0 : i32
    return %arg0, %c0_i32, %c0_i32_0 : i32, i32, i32
  }
}

module attributes {stable_mosaic.version = 11 : i64} {
  func.func @kernel(%arg0: i32, %arg1: i32, %arg2: memref<2xf32, #tpu.memory_space<smem>>, %arg3: memref<8x16xf32, #tpu.memory_space<vmem>>, %arg4: memref<8x16xf32, #tpu.memory_space<vmem>>, %arg5: memref<8x8xf32, #tpu.memory_space<vmem>>, %arg6: memref<8x128xf32, #tpu.memory_space<vmem>>, %arg7: memref<8x128xf32, #tpu.memory_space<vmem>>, %arg8: memref<16x16xf32, #tpu.memory_space<vmem>>, %arg9: memref<16x128xf32, #tpu.memory_space<vmem>>, %arg10: memref<16x128xf32, #tpu.memory_space<vmem>>, %arg11: memref<1x8x128xf32, #tpu.memory_space<vmem>>, %arg12: memref<8x16xf32, #tpu.memory_space<vmem>>, %arg13: memref<8x128xf32, #tpu.memory_space<vmem>>, %arg14: memref<16x128xf32, #tpu.memory_space<vmem>>) attributes {dimension_semantics = [#tpu.dimension_semantics<parallel>, #tpu.dimension_semantics<arbitrary>], iteration_bounds = array<i64: 2, 1>, scalar_prefetch = 0 : i64, scratch_operands = 3 : i64, tpu.core_type = #tpu.core_type<tc>, window_params = [{transform_indices = @transform_0, window_bounds = array<i64: 2>}, {transform_indices = @transform_1, window_bounds = array<i64: 8, 16>}, {transform_indices = @transform_2, window_bounds = array<i64: 8, 16>}, {transform_indices = @transform_3, window_bounds = array<i64: 8, 8>}, {pipeline_mode = #tpu.pipeline_mode<synchronous>, transform_indices = @transform_4, window_bounds = array<i64: 8, 128>}, {transform_indices = @transform_5, window_bounds = array<i64: 8, 128>}, {transform_indices = @transform_6, window_bounds = array<i64: 16, 16>}, {pipeline_mode = #tpu.pipeline_mode<synchronous>, transform_indices = @transform_7, window_bounds = array<i64: 16, 128>}, {transform_indices = @transform_8, window_bounds = array<i64: 16, 128>}, {transform_indices = @transform_9, window_bounds = array<i64: 1, 8, 128>}]} {
    %c1_i32 = arith.constant 1 : i32
    %0 = arith.muli %arg0, %c1_i32 : i32
    %1 = arith.addi %0, %arg1 : i32
    %c0_i32 = arith.constant 0 : i32
    %2 = arith.cmpi eq, %arg1, %c0_i32 : i32
    %3 = arith.extui %2 : i1 to i32
    %c0_i32_0 = arith.constant 0 : i32
    %4 = arith.cmpi ne, %3, %c0_i32_0 : i32
    scf.if %4 {
      %cst = arith.constant 0.000000e+00 : f32
      %17 = vector.broadcast %cst : f32 to vector<8x16xf32>
      %c0 = arith.constant 0 : index
      %c0_9 = arith.constant 0 : index
      %18 = vector.load %arg12[%c0, %c0_9] : memref<8x16xf32, #tpu.memory_space<vmem>>, vector<8x16xf32>
      tpu.vector_store %arg12[%c0, %c0_9], %17 {strides = array<i32>} : memref<8x16xf32, #tpu.memory_space<vmem>>, vector<8x16xf32>,
      %cst_10 = arith.constant 0.000000e+00 : f32
      %19 = vector.broadcast %cst_10 : f32 to vector<8x128xf32>
      %c0_11 = arith.constant 0 : index
      %c0_12 = arith.constant 0 : index
      %20 = vector.load %arg13[%c0_11, %c0_12] : memref<8x128xf32, #tpu.memory_space<vmem>>, vector<8x128xf32>
      tpu.vector_store %arg13[%c0_11, %c0_12], %19 {strides = array<i32>} : memref<8x128xf32, #tpu.memory_space<vmem>>, vector<8x128xf32>,
      %cst_13 = arith.constant 0.000000e+00 : f32
      %21 = vector.broadcast %cst_13 : f32 to vector<16x128xf32>
      %c0_14 = arith.constant 0 : index
      %c0_15 = arith.constant 0 : index
      %22 = vector.load %arg14[%c0_14, %c0_15] : memref<16x128xf32, #tpu.memory_space<vmem>>, vector<16x128xf32>
      tpu.vector_store %arg14[%c0_14, %c0_15], %21 {strides = array<i32>} : memref<16x128xf32, #tpu.memory_space<vmem>>, vector<16x128xf32>,
    } else {
    }
    %c1_i32_1 = arith.constant 1 : i32
    %5 = arith.cmpi slt, %1, %c1_i32_1 : i32
    %6 = arith.extui %5 : i1 to i32
    %c0_i32_2 = arith.constant 0 : i32
    %7 = arith.cmpi ne, %6, %c0_i32_2 : i32
    scf.if %7 {
      %c0 = arith.constant 0 : index
      %c0_9 = arith.constant 0 : index
      %17 = vector.load %arg3[%c0, %c0_9] : memref<8x16xf32, #tpu.memory_space<vmem>>, vector<8x16xf32>
      %c0_10 = arith.constant 0 : index
      %c0_11 = arith.constant 0 : index
      %18 = vector.load %arg4[%c0_10, %c0_11] : memref<8x16xf32, #tpu.memory_space<vmem>>, vector<8x16xf32>
      %19 = arith.subf %17, %18 : vector<8x16xf32>
      %20 = arith.mulf %19, %19 : vector<8x16xf32>
      %c0_12 = arith.constant 0 : index
      %c0_13 = arith.constant 0 : index
      %21 = vector.load %arg12[%c0_12, %c0_13] : memref<8x16xf32, #tpu.memory_space<vmem>>, vector<8x16xf32>
      %22 = arith.addf %21, %20 : vector<8x16xf32>
      %c0_14 = arith.constant 0 : index
      %c0_15 = arith.constant 0 : index
      %23 = vector.load %arg12[%c0_14, %c0_15] : memref<8x16xf32, #tpu.memory_space<vmem>>, vector<8x16xf32>
      tpu.vector_store %arg12[%c0_14, %c0_15], %22 {strides = array<i32>} : memref<8x16xf32, #tpu.memory_space<vmem>>, vector<8x16xf32>,
    } else {
    }
    %c1_i32_3 = arith.constant 1 : i32
    %8 = arith.cmpi slt, %1, %c1_i32_3 : i32
    %9 = arith.extui %8 : i1 to i32
    %c0_i32_4 = arith.constant 0 : i32
    %10 = arith.cmpi ne, %9, %c0_i32_4 : i32
    scf.if %10 {
      %c0 = arith.constant 0 : index
      %c0_9 = arith.constant 0 : index
      %17 = vector.load %arg5[%c0, %c0_9] : memref<8x8xf32, #tpu.memory_space<vmem>>, vector<8x8xf32>
      %c0_10 = arith.constant 0 : index
      %c0_11 = arith.constant 0 : index
      %18 = vector.load %arg6[%c0_10, %c0_11] : memref<8x128xf32, #tpu.memory_space<vmem>>, vector<8x128xf32>
      %cst = arith.constant dense<0.000000e+00> : vector<8x128xf32>
      %19 = tpu.matmul %17, %18, %cst {dimension_numbers = #tpu.dot_dimension_numbers<[1], [0], [0], [1], [0, 0, 1, 1], [], []>} : vector<8x8xf32>, vector<8x128xf32>, vector<8x128xf32> -> vector<8x128xf32>
      %c0_12 = arith.constant 0 : index
      %c0_13 = arith.constant 0 : index
      %20 = vector.load %arg7[%c0_12, %c0_13] : memref<8x128xf32, #tpu.memory_space<vmem>>, vector<8x128xf32>
      %21 = arith.mulf %20, %19 : vector<8x128xf32>
      %c0_14 = arith.constant 0 : index
      %c0_15 = arith.constant 0 : index
      %22 = vector.load %arg13[%c0_14, %c0_15] : memref<8x128xf32, #tpu.memory_space<vmem>>, vector<8x128xf32>
      %23 = arith.addf %22, %21 : vector<8x128xf32>
      %c0_16 = arith.constant 0 : index
      %c0_17 = arith.constant 0 : index
      %24 = vector.load %arg13[%c0_16, %c0_17] : memref<8x128xf32, #tpu.memory_space<vmem>>, vector<8x128xf32>
      tpu.vector_store %arg13[%c0_16, %c0_17], %23 {strides = array<i32>} : memref<8x128xf32, #tpu.memory_space<vmem>>, vector<8x128xf32>,
    } else {
    }
    %c1_i32_5 = arith.constant 1 : i32
    %11 = arith.cmpi slt, %1, %c1_i32_5 : i32
    %12 = arith.extui %11 : i1 to i32
    %c0_i32_6 = arith.constant 0 : i32
    %13 = arith.cmpi ne, %12, %c0_i32_6 : i32
    scf.if %13 {
      %c0 = arith.constant 0 : index
      %c0_9 = arith.constant 0 : index
      %17 = vector.load %arg8[%c0, %c0_9] : memref<16x16xf32, #tpu.memory_space<vmem>>, vector<16x16xf32>
      %c0_10 = arith.constant 0 : index
      %c0_11 = arith.constant 0 : index
      %18 = vector.load %arg9[%c0_10, %c0_11] : memref<16x128xf32, #tpu.memory_space<vmem>>, vector<16x128xf32>
      %cst = arith.constant dense<0.000000e+00> : vector<16x128xf32>
      %19 = tpu.matmul %17, %18, %cst {dimension_numbers = #tpu.dot_dimension_numbers<[1], [0], [0], [1], [0, 0, 1, 1], [], []>} : vector<16x16xf32>, vector<16x128xf32>, vector<16x128xf32> -> vector<16x128xf32>
      %c0_12 = arith.constant 0 : index
      %c0_13 = arith.constant 0 : index
      %20 = vector.load %arg10[%c0_12, %c0_13] : memref<16x128xf32, #tpu.memory_space<vmem>>, vector<16x128xf32>
      %21 = arith.mulf %20, %19 : vector<16x128xf32>
      %c0_14 = arith.constant 0 : index
      %c0_15 = arith.constant 0 : index
      %22 = vector.load %arg14[%c0_14, %c0_15] : memref<16x128xf32, #tpu.memory_space<vmem>>, vector<16x128xf32>
      %23 = arith.addf %22, %21 : vector<16x128xf32>
      %c0_16 = arith.constant 0 : index
      %c0_17 = arith.constant 0 : index
      %24 = vector.load %arg14[%c0_16, %c0_17] : memref<16x128xf32, #tpu.memory_space<vmem>>, vector<16x128xf32>
      tpu.vector_store %arg14[%c0_16, %c0_17], %23 {strides = array<i32>} : memref<16x128xf32, #tpu.memory_space<vmem>>, vector<16x128xf32>,
    } else {
    }
    %c0_i32_7 = arith.constant 0 : i32
    %14 = arith.cmpi eq, %arg1, %c0_i32_7 : i32
    %15 = arith.extui %14 : i1 to i32
    %c0_i32_8 = arith.constant 0 : i32
    %16 = arith.cmpi ne, %15, %c0_i32_8 : i32
    scf.if %16 {
      %c0 = arith.constant 0 : index
      %c0_9 = arith.constant 0 : index
      %17 = vector.load %arg12[%c0, %c0_9] : memref<8x16xf32, #tpu.memory_space<vmem>>, vector<8x16xf32>
      %18 = vector.shape_cast %17 : vector<8x16xf32> to vector<1x8x16xf32>
      %cst = arith.constant dense<0.000000e+00> : vector<1xf32>
      %19 = vector.multi_reduction <add>, %18, %cst [1, 2] : vector<1x8x16xf32> to vector<1xf32>
      %20 = vector.shape_cast %19 : vector<1xf32> to vector<1x1x1xf32>
      %21 = vector.extract %20[0, 0, 0] : f32 from vector<1x1x1xf32>
      %c0_10 = arith.constant 0 : index
      %22 = memref.load %arg2[%c0_10] : memref<2xf32, #tpu.memory_space<smem>>
      %c0_11 = arith.constant 0 : index
      %c0_12 = arith.constant 0 : index
      %23 = vector.load %arg13[%c0_11, %c0_12] : memref<8x128xf32, #tpu.memory_space<vmem>>, vector<8x128xf32>
      %24 = vector.shape_cast %23 : vector<8x128xf32> to vector<1x8x128xf32>
      %cst_13 = arith.constant dense<0.000000e+00> : vector<1xf32>
      %25 = vector.multi_reduction <add>, %24, %cst_13 [1, 2] : vector<1x8x128xf32> to vector<1xf32>
      %26 = vector.shape_cast %25 : vector<1xf32> to vector<1x1x1xf32>
      %27 = vector.extract %26[0, 0, 0] : f32 from vector<1x1x1xf32>
      %28 = arith.mulf %22, %27 : f32
      %29 = arith.addf %21, %28 : f32
      %c1 = arith.constant 1 : index
      %30 = memref.load %arg2[%c1] : memref<2xf32, #tpu.memory_space<smem>>
      %c0_14 = arith.constant 0 : index
      %c0_15 = arith.constant 0 : index
      %31 = vector.load %arg14[%c0_14, %c0_15] : memref<16x128xf32, #tpu.memory_space<vmem>>, vector<16x128xf32>
      %32 = vector.shape_cast %31 : vector<16x128xf32> to vector<1x16x128xf32>
      %cst_16 = arith.constant dense<0.000000e+00> : vector<1xf32>
      %33 = vector.multi_reduction <add>, %32, %cst_16 [1, 2] : vector<1x16x128xf32> to vector<1xf32>
      %34 = vector.shape_cast %33 : vector<1xf32> to vector<1x1x1xf32>
      %35 = vector.extract %34[0, 0, 0] : f32 from vector<1x1x1xf32>
      %36 = arith.mulf %30, %35 : f32
      %37 = arith.addf %29, %36 : f32
      %38 = vector.broadcast %37 : f32 to vector<1x8x128xf32>
      %c0_17 = arith.constant 0 : index
      %c0_18 = arith.constant 0 : index
      %c0_19 = arith.constant 0 : index
      %39 = vector.load %arg11[%c0_17, %c0_18, %c0_19] : memref<1x8x128xf32, #tpu.memory_space<vmem>>, vector<1x8x128xf32>
      tpu.vector_store %arg11[%c0_17, %c0_18, %c0_19], %38 {strides = array<i32>} : memref<1x8x128xf32, #tpu.memory_space<vmem>>, vector<1x8x128xf32>,
    } else {
    }
    return
  }
  func.func @transform_0(%arg0: i32, %arg1: i32) -> i32 {
    %c0_i32 = arith.constant 0 : i32
    %c0_i32_0 = arith.constant 0 : i32
    return %c0_i32 : i32
  }
  func.func @transform_1(%arg0: i32, %arg1: i32) -> (i32, i32) {
    %c1_i32 = arith.constant 1 : i32
    %0 = arith.muli %arg0, %c1_i32 : i32
    %1 = arith.addi %0, %arg1 : i32
    %c0_i32 = arith.constant 0 : i32
    %2 = arith.minsi %1, %c0_i32 : i32
    %c0_i32_0 = arith.constant 0 : i32
    %c0_i32_1 = arith.constant 0 : i32
    return %2, %c0_i32_0 : i32, i32
  }
  func.func @transform_2(%arg0: i32, %arg1: i32) -> (i32, i32) {
    %c1_i32 = arith.constant 1 : i32
    %0 = arith.muli %arg0, %c1_i32 : i32
    %1 = arith.addi %0, %arg1 : i32
    %c0_i32 = arith.constant 0 : i32
    %2 = arith.minsi %1, %c0_i32 : i32
    %c0_i32_0 = arith.constant 0 : i32
    %c0_i32_1 = arith.constant 0 : i32
    return %2, %c0_i32_0 : i32, i32
  }
  func.func @transform_3(%arg0: i32, %arg1: i32) -> (i32, i32) {
    %c1_i32 = arith.constant 1 : i32
    %0 = arith.muli %arg0, %c1_i32 : i32
    %1 = arith.addi %0, %arg1 : i32
    %c0_i32 = arith.constant 0 : i32
    %2 = arith.minsi %1, %c0_i32 : i32
    %c0_i32_0 = arith.constant 0 : i32
    %c0_i32_1 = arith.constant 0 : i32
    return %2, %c0_i32_0 : i32, i32
  }
  func.func @transform_4(%arg0: i32, %arg1: i32) -> (i32, i32) {
    %c0_i32 = arith.constant 0 : i32
    %c0_i32_0 = arith.constant 0 : i32
    %c0_i32_1 = arith.constant 0 : i32
    return %c0_i32, %c0_i32_0 : i32, i32
  }
  func.func @transform_5(%arg0: i32, %arg1: i32) -> (i32, i32) {
    %c1_i32 = arith.constant 1 : i32
    %0 = arith.muli %arg0, %c1_i32 : i32
    %1 = arith.addi %0, %arg1 : i32
    %c0_i32 = arith.constant 0 : i32
    %2 = arith.minsi %1, %c0_i32 : i32
    %c0_i32_0 = arith.constant 0 : i32
    %c0_i32_1 = arith.constant 0 : i32
    return %2, %c0_i32_0 : i32, i32
  }
  func.func @transform_6(%arg0: i32, %arg1: i32) -> (i32, i32) {
    %c1_i32 = arith.constant 1 : i32
    %0 = arith.muli %arg0, %c1_i32 : i32
    %1 = arith.addi %0, %arg1 : i32
    %c0_i32 = arith.constant 0 : i32
    %2 = arith.minsi %1, %c0_i32 : i32
    %c0_i32_0 = arith.constant 0 : i32
    %c0_i32_1 = arith.constant 0 : i32
    return %2, %c0_i32_0 : i32, i32
  }
  func.func @transform_7(%arg0: i32, %arg1: i32) -> (i32, i32) {
    %c0_i32 = arith.constant 0 : i32
    %c0_i32_0 = arith.constant 0 : i32
    %c0_i32_1 = arith.constant 0 : i32
    return %c0_i32, %c0_i32_0 : i32, i32
  }
  func.func @transform_8(%arg0: i32, %arg1: i32) -> (i32, i32) {
    %c1_i32 = arith.constant 1 : i32
    %0 = arith.muli %arg0, %c1_i32 : i32
    %1 = arith.addi %0, %arg1 : i32
    %c0_i32 = arith.constant 0 : i32
    %2 = arith.minsi %1, %c0_i32 : i32
    %c0_i32_0 = arith.constant 0 : i32
    %c0_i32_1 = arith.constant 0 : i32
    return %2, %c0_i32_0 : i32, i32
  }
  func.func @transform_9(%arg0: i32, %arg1: i32) -> (i32, i32, i32) {
    %c0_i32 = arith.constant 0 : i32
    %c0_i32_0 = arith.constant 0 : i32
    %c0_i32_1 = arith.constant 0 : i32
    return %arg0, %c0_i32, %c0_i32_0 : i32, i32, i32
  }
}

</mosaic_0001>

<bundles_post_ra>
// kernel: tpu_custom_call.1
= control target key start
LH: loop header
LB: loop body
LE: loop exit
PB: predicated region body
PF: predicated region fallthrough
CT: control target
= control target key end

     0   :  { %s2139_s0 = inlined_call_operand.hbm [shape: f32[2], index: 0, kind: input, shape index: {}]   ;;  %s2140_s1 = inlined_call_operand.hbm [shape: f32[8,16], index: 1, kind: input, shape index: {}]   ;;  %s2141_s2 = inlined_call_operand.hbm [shape: f32[8,16], index: 2, kind: input, shape index: {}]   ;;  %s2142_s3 = inlined_call_operand.hbm [shape: f32[8,8], index: 3, kind: input, shape index: {}]   ;;  %s2143_s4 = inlined_call_operand.hbm [shape: f32[8,128], index: 4, kind: input, shape index: {}]   ;;  %s2144_s5 = inlined_call_operand.hbm [shape: f32[8,128], index: 5, kind: input, shape index: {}]   ;;  %s2145_s6 = inlined_call_operand.vmem [shape: f32[16,16], index: 6, kind: input, shape index: {}]   ;;  %s2146_s7 = inlined_call_operand.hbm [shape: f32[16,128], index: 7, kind: input, shape index: {}]   ;;  %s2147_s8 = inlined_call_operand.hbm [shape: f32[16,128], index: 8, kind: input, shape index: {}]   ;;  %s2148_s9 = inlined_call_operand.hbm [shape: f32[2,8,128], index: 9, kind: output, shape index: {}]  }
   0x1   :  { %2175 = sst [smem:[#allocation36_spill]] %s2145_s6 }
   0x2   :  { %2176 = sst [smem:[#allocation37_spill]] %s2146_s7 }
   0x3   :  { %2177 = sst [smem:[#allocation38_spill]] %s2148_s9 }
   0x4   :  { %14 = vsyncpa [#allocation8], 0 }
   0x5   :  { %15 = vsyncpa [#allocation6], 0 }
   0x6   :  { %17 = vsyncpa [#allocation6 + $0x1], 0 }
   0x7   :  { %18 = vsyncpa [#allocation11], 0 }
   0x8   :  { %20 = vsyncpa [#allocation11 + $0x1], 0 }
   0x9   :  { %21 = vsyncpa [#allocation14], 0 }
   0xa   :  { %22 = vsyncpa [#allocation7], 0 }
   0xb   :  { %24 = vsyncpa [#allocation7 + $0x1], 0  ;;  %s1728_s30 = smov 0   ;;  %s1730_s10 = smov 0  }
   0xc   :  { %s1732_s11 = smov 0   ;;  %s1734_s12 = smov 0  }
   0xd   :  { %s1736_s13 = smov 0   ;;  %s1738_s14 = smov 0  }
   0xe   :  { %s1740_s15 = smov 0   ;;  %s1742_s16 = smov 0  }
   0xf LB: > { %2178 = sst [smem:[#allocation27_spill]] %s1634_s30  ;;  %s1767_s17 = sadd.s32 4294967295, %s1662_s16   ;;  %s1662_s16 = sphi %s1742_s16, %s30_s16   ;;  %s1658_s15 = sphi %s1740_s15, %s2231_s15   ;;  %s1654_s14 = sphi %s1738_s14, %s2230_s14   ;;  %s1650_s13 = sphi %s1736_s13, %s2129_s13   ;;  %s1646_s12 = sphi %s1734_s12, %s2232_s12   ;;  %s1642_s11 = sphi %s1732_s11, %s2229_s11   ;;  %s1638_s10 = sphi %s1730_s10, %s2228_s10   ;;  %s1634_s30 = sphi %s1728_s30, %s2227_s30  }
  0x10   : > { %2179 = sst [smem:[#allocation28_spill]] %s1638_s10  ;;  %s1107_s18 = sadd.s32 4294967294, %s1662_s16  }
  0x11   : > { %2180 = sst [smem:[#allocation29_spill]] %s1642_s11  ;;  %p89_p0 = scmp.ne.s32.totalorder %s1650_s13, %s1646_s12 }
  0x12   : > { %2181 = sst [smem:[#allocation30_spill]] %s1654_s14  ;;  %p2151_p1 = scmp.eq.s32.totalorder %s1767_s17, 0 }
  0x13   : > { %2182 = sst [smem:[#allocation31_spill]] %s1658_s15  ;;  %p314_p2 = scmp.ne.s32.totalorder %s1642_s11, %s1638_s10 }
  0x14   : > { %p1777_p3 = por %p2151_p1, %p89_p0  ;;  %p315_p4 = scmp.eq.s32.totalorder %s1767_s17, 1 }
  0x15   : > { %p320_p5 = scmp.ne.s32.totalorder %s1638_s10, %s1634_s30  ;;  %p321_p6 = scmp.eq.s32.totalorder %s1107_s18, 1 }
  0x16   : > { %s2183_s20 = scalar_select %p1777_p3, 1, 0 }
  0x17   : > { %p1784_p7 = por %p315_p4, %p314_p2  ;;  %p1108_p8 = scmp.ge.s32.totalorder %s1662_s16, 1 }
  0x18   : > { %p1789_p9 = por %p321_p6, %p320_p5  ;;  %p328_p10 = scmp.lt.s32.totalorder %s1662_s16, 3 }
  0x19   : > { %s2184_s21 = scalar_select %p1784_p7, 1, 0 }
  0x1a   : > { %s2186_s22 = scalar_select %p1789_p9, 1, 0 }
  0x1b   : > { %2185 = sst [smem:[#allocation32_spill]] %s2184_s21  ;;  %p1794_p11 = pnand %p1108_p8, %p328_p10 }
  0x1c   : > { %2187 = sst [smem:[#allocation33_spill]] %s2186_s22  ;;  %s1664_s24 = smov [#allocation16]  }
  0x1d   : > { %s2188_s23 = scalar_select %p1794_p11, 1, 0 }
  0x1e   : > { %s360_s25 = sshll.u32 %s1664_s24, 4  ;;  %p1198_p12 = pneg %p1794_p11  ;;  %s361_s25 = int_to_ptr.vmem [resolvable:$true] %s360_s25 }
  0x1f   : > { %s42_s27 = sadd.s32 1, %s1658_s15  ;;  %s2190_s7 = sld [smem:[#allocation37_spill]] }
  0x20   : > { %p1803_p0 = pnand %p1198_p12, %p2151_p1 }
  0x22   : > { %s2189_s26 = scalar_select %p1803_p0, 1, 0 }
  0x23   : > { %p1816_p4 = pneg %p1803_p0 }
  0x25   : > { %s1316_s12 = scalar_lea.hbm %s2190_s7, 256 }
  0x26   : > { %p1317_p2 = scmp.ne.s32.totalorder %s2190_s7, %s1316_s12  ;;  %p1323_p8 = scmp.lt.u32.totalorder %s1316_s12, %s2190_s7 }
  0x27   : > { %s2191_s24 = scalar_select %p1816_p4, 1, 0 }
  0x28   : > { %p1319_p5 = pnand %p1816_p4, %p1317_p2 }
  0x2a   : > { %p1320_p6 = pneg %p1319_p5 }
  0x2c   : > { %p1325_p10 = pnand %p1323_p8, %p1320_p6 }
  0x2e   : > { %1328 = shalt.err (!%p1325_p10)
}
  0x2f   : > { %s1329_s28 = scalar_lea.vmem %s361_s25, 256  ;;  %p1337_p9 = scmp.lt.s32.totalorder %s361_s25, %s361_s25 }
  0x30   : > { %p1330_p12 = scmp.ne.s32.totalorder %s361_s25, %s1329_s28  ;;  %p1338_p7 = scmp.lt.s32.totalorder %s1329_s28, %s1329_s28 }
  0x32   : > { %p1332_p13 = pnand %p1330_p12, %p1816_p4  ;;  %p1339_p3 = por %p1338_p7, %p1337_p9 }
  0x34   : > { %p1333_p1 = pneg %p1332_p13 }
  0x36   : > { %p1340_p11 = pnand %p1339_p3, %p1333_p1 }
  0x38   : > { %1343 = shalt.err (!%p1340_p11)
}
  0x39   : > { %s2158_s19 = smov 128   ;;  %s2159_s30 = smov 8  }
  0x3a   : > { %1207 = dma.hbm_to_vmem [thread:$0]  (!%p1803_p0), %s2190_s7, 256, %s361_s25, [#allocation11], %s2158_s19, %s2158_s19, %s2159_s30  }
  0x3b   : > { %p44_p1 = scmp.ge.s32.totalorder %s42_s27, 2  ;;  %p1631_p3 = scmp.ne.s32.totalorder %s1650_s13, 0 }
  0x3c   : > { %p84_p7 = scmp.eq.s32.totalorder %s1662_s16, 0  ;;  %p1231_p9 = scmp.lt.s32.totalorder %s1662_s16, 2 }
  0x3d   : > { %s2234_s27 = smov (%p44_p1, %s42_s27), 0  ;;  %s2161_s18 = sand.u32 1, %s1662_s16  }
  0x3e   : > { %2192 = sst [smem:[#allocation34_spill]] %s2234_s27  ;;  %s301_s12 = ssub.s32 %s1658_s15, %s2234_s27 }
  0x3f   : > { %p85_p11 = por %p1631_p3, %p84_p7  ;;  %p302_p13 = scmp.eq.s32.totalorder %s301_s12, 0 }
  0x40   : > { %s2193_s28 = sadd.s32 1, %s1642_s11  ;;  %s1667_s25 = smov [#allocation9]  }
  0x41   : > { %s1846_s9 = scalar_select %p302_p13, %s1642_s11, %s2193_s28  }
  0x42   : > { %p1848_p2 = pnand %p1231_p9, %p85_p11  ;;  %s388_s22 = sshll.u32 %s1667_s25, 4  ;;  %s389_s22 = int_to_ptr.vmem [resolvable:$true] %s388_s22 }
  0x43   : > { %2194 = sst [smem:[#allocation35_spill]] %s1846_s9  ;;  %s1854_s29 = scalar_lea.sflag [#allocation6], %s2161_s18 }
  0x44   : > { %s2195_s21 = scalar_select %p1848_p2, 1, 0 }
  0x45   : > { %s1344_s7 = scalar_lea.hbm %s2140_s1, 128  ;;  %p1864_p6 = pneg %p1848_p2 }
  0x46   : > { %p1345_p5 = scmp.ne.s32.totalorder %s2140_s1, %s1344_s7  ;;  %p1351_p12 = scmp.lt.u32.totalorder %s1344_s7, %s1344_s7 }
  0x47   : > { %s2196_s28 = scalar_select %p1864_p6, 1, 0 }
  0x48   : > { %p1347_p8 = pnand %p1864_p6, %p1345_p5  ;;  %p1353_p1 = scmp.lt.u32.totalorder %s1344_s7, %s2140_s1 }
  0x4a   : > { %p1348_p10 = pneg %p1347_p8  ;;  %p1354_p3 = por %p1353_p1, %p1351_p12 }
  0x4c   : > { %p1355_p7 = pnand %p1354_p3, %p1348_p10 }
  0x4e   : > { %1358 = shalt.err (!%p1355_p7)
}
  0x4f   : > { %s1359_s19 = scalar_lea.vmem %s389_s22, 128  ;;  %s1366_s27 = scalar_lea.vmem %s389_s22, 256 }
  0x50   : > { %p1360_p9 = scmp.ne.s32.totalorder %s389_s22, %s1359_s19  ;;  %p1367_p0 = scmp.lt.s32.totalorder %s389_s22, %s389_s22 }
  0x51   : > { %p1368_p4 = scmp.lt.s32.totalorder %s1366_s27, %s1359_s19 }
  0x52   : > { %p1362_p11 = pnand %p1360_p9, %p1864_p6 }
  0x53   : > { %p1369_p2 = por %p1368_p4, %p1367_p0 }
  0x54   : > { %p1363_p13 = pneg %p1362_p11 }
  0x56   : > { %p1370_p5 = pnand %p1369_p2, %p1363_p13 }
  0x58   : > { %1373 = shalt.err (!%p1370_p5)
}
  0x59   : > { %p2197_p8 = scmp.ne.s32.totalorder %s2195_s21, 0  ;;  %s1668_s18 = smov [#allocation17]  }
  0x5a   : > { %s487_s12 = sshll.u32 %s1668_s18, 4  ;;  %s1669_s25 = smov [#allocation10]   ;;  %s1881_s12 = int_to_ptr.vmem [resolvable:$true] %s487_s12 }
  0x5b   : > { %1211 = dma.hbm_to_vmem [thread:$0]  (!%p2197_p8), %s2140_s1, 128, %s389_s22, %s1854_s29  }
  0x5c   : > { %s409_s15 = sshll.u32 %s1669_s25, 4  ;;  %s2198_s19 = sand.u32 1, %s1662_s16   ;;  %s410_s15 = int_to_ptr.vmem [resolvable:$true] %s409_s15 }
  0x5d   : > { %s1885_s27 = scalar_lea.sflag [#allocation11], %s2198_s19  ;;  %s1374_s6 = scalar_lea.hbm %s2141_s2, 128 }
  0x5e   : > { %p1375_p0 = scmp.ne.s32.totalorder %s2141_s2, %s1374_s6  ;;  %p1381_p10 = scmp.lt.u32.totalorder %s1374_s6, %s1374_s6 }
  0x5f   : > { %p1383_p12 = scmp.lt.u32.totalorder %s1374_s6, %s2141_s2 }
  0x60   : > { %p1377_p4 = pnand %p1375_p0, %p1864_p6 }
  0x61   : > { %p1384_p1 = por %p1383_p12, %p1381_p10 }
  0x62   : > { %p1378_p2 = pneg %p1377_p4 }
  0x64   : > { %p1385_p3 = pnand %p1384_p1, %p1378_p2 }
  0x66   : > { %1388 = shalt.err (!%p1385_p3)
}
  0x67   : > { %s1389_s7 = scalar_lea.vmem %s410_s15, 128  ;;  %s1396_s9 = scalar_lea.vmem %s410_s15, 256 }
  0x68   : > { %p1390_p7 = scmp.ne.s32.totalorder %s410_s15, %s1389_s7  ;;  %p1397_p13 = scmp.lt.s32.totalorder %s410_s15, %s410_s15 }
  0x69   : > { %p1398_p5 = scmp.lt.s32.totalorder %s1396_s9, %s1389_s7 }
  0x6a   : > { %p1392_p9 = pnand %p1390_p7, %p1864_p6 }
  0x6b   : > { %p1399_p8 = por %p1398_p5, %p1397_p13 }
  0x6c   : > { %p1393_p11 = pneg %p1392_p9 }
  0x6e   : > { %p1400_p0 = pnand %p1399_p8, %p1393_p11 }
  0x70   : > { %1403 = shalt.err (!%p1400_p0)
}
  0x71   : > { %p2199_p4 = scmp.ne.s32.totalorder %s2195_s21, 0  ;;  %s1670_s11 = smov [#allocation15]  }
  0x72   : > { %s451_s14 = sshll.u32 %s1670_s11, 4  ;;  %s1404_s19 = scalar_lea.hbm %s2144_s5, 128  ;;  %s452_s14 = int_to_ptr.vmem [resolvable:$true] %s451_s14 }
  0x73   : > { %1214 = dma.hbm_to_vmem [thread:$0]  (!%p2199_p4), %s2141_s2, 128, %s410_s15, %s1885_s27  }
  0x74   : > { %p1405_p8 = scmp.ne.s32.totalorder %s2144_s5, %s1404_s19  ;;  %p1411_p12 = scmp.lt.u32.totalorder %s1404_s19, %s1404_s19 }
  0x75   : > { %p1413_p1 = scmp.lt.u32.totalorder %s1404_s19, %s2144_s5 }
  0x76   : > { %p1407_p2 = pnand %p1405_p8, %p1864_p6 }
  0x77   : > { %p1414_p3 = por %p1413_p1, %p1411_p12 }
  0x78   : > { %p1408_p10 = pneg %p1407_p2 }
  0x7a   : > { %p1415_p7 = pnand %p1414_p3, %p1408_p10 }
  0x7c   : > { %1418 = shalt.err (!%p1415_p7)
}
  0x7d   : > { %s1419_s15 = scalar_lea.vmem %s452_s14, 128  ;;  %s1426_s10 = scalar_lea.vmem %s452_s14, 256 }
  0x7e   : > { %p1420_p9 = scmp.ne.s32.totalorder %s452_s14, %s1419_s15  ;;  %p1427_p5 = scmp.lt.s32.totalorder %s452_s14, %s452_s14 }
  0x7f   : > { %p1428_p0 = scmp.lt.s32.totalorder %s1426_s10, %s1419_s15 }
  0x80   : > { %p1422_p11 = pnand %p1420_p9, %p1864_p6 }
  0x81   : > { %p1429_p4 = por %p1428_p0, %p1427_p5 }
  0x82   : > { %p1423_p13 = pneg %p1422_p11 }
  0x84   : > { %p1430_p8 = pnand %p1429_p4, %p1423_p13 }
  0x86   : > { %1433 = shalt.err (!%p1430_p8)
}
  0x87   : > { %p2200_p2 = scmp.ne.s32.totalorder %s2195_s21, 0  ;;  %s1434_s19 = scalar_lea.hbm %s2139_s0, 16 }
  0x88   : > { %p1435_p10 = scmp.ne.s32.totalorder %s2139_s0, %s1434_s19  ;;  %p2201_p12 = scmp.ne.s32.totalorder %s2191_s24, 0 }
  0x89   : > { %1220 = dma.hbm_to_vmem [thread:$0]  (!%p2200_p2), %s2144_s5, 128, %s452_s14, %s1854_s29  }
  0x8a   : > { %p1437_p1 = pnand %p1435_p10, %p2201_p12  ;;  %p1441_p3 = scmp.lt.u32.totalorder %s1434_s19, %s2139_s0 }
  0x8c   : > { %p1438_p4 = pneg %p1437_p1 }
  0x8e   : > { %p1443_p7 = pnand %p1441_p3, %p1438_p4 }
  0x90   : > { %1446 = shalt.err (!%p1443_p7)
}
  0x91   : > { %s1671_s15 = smov [#allocation5]   ;;  %p2202_p9 = scmp.ne.s32.totalorder %s2189_s26, 0 }
  0x92   : > { %s1672_s6 = smov [#allocation13]   ;;  %s1447_s22 = scalar_lea.hbm %s2143_s4, 128 }
  0x93   : > { %1201 = dma.hbm_to_smem (!%p2202_p9), %s2139_s0, 16, %s1671_s15, [#allocation8]  }
  0x94   : > { %s350_s11 = sshll.u32 %s1672_s6, 4  ;;  %p1448_p11 = scmp.ne.s32.totalorder %s2143_s4, %s1447_s22  ;;  %s351_s11 = int_to_ptr.vmem [resolvable:$true] %s350_s11 }
  0x95   : > { %p1454_p0 = scmp.lt.u32.totalorder %s1447_s22, %s2143_s4 }
  0x96   : > { %p1450_p13 = pnand %p1448_p11, %p2201_p12 }
  0x98   : > { %p1451_p5 = pneg %p1450_p13 }
  0x9a   : > { %p1456_p8 = pnand %p1454_p0, %p1451_p5 }
  0x9c   : > { %1459 = shalt.err (!%p1456_p8)
}
  0x9d   : > { %s1460_s15 = scalar_lea.vmem %s351_s11, 128  ;;  %p1468_p3 = scmp.lt.s32.totalorder %s351_s11, %s351_s11 }
  0x9e   : > { %p1461_p10 = scmp.ne.s32.totalorder %s351_s11, %s1460_s15  ;;  %p1469_p7 = scmp.lt.s32.totalorder %s1460_s15, %s1460_s15 }
  0xa0   : > { %p1463_p1 = pnand %p1461_p10, %p2201_p12  ;;  %p1470_p2 = por %p1469_p7, %p1468_p3 }
  0xa2   : > { %p1464_p4 = pneg %p1463_p1 }
  0xa4   : > { %p1471_p6 = pnand %p1470_p2, %p1464_p4 }
  0xa6   : > { %1474 = shalt.err (!%p1471_p6)
}
  0xa7   : > { %1204 = dma.hbm_to_vmem [thread:$0]  (!%p2202_p9), %s2143_s4, 128, %s351_s11, [#allocation14]  }
  0xa8   : > { %s1673_s6 = smov [#allocation12]   ;;  %s1475_s24 = scalar_lea.hbm %s2142_s3, 128 }
  0xa9   : > { %s430_s18 = sshll.u32 %s1673_s6, 4  ;;  %p1476_p12 = scmp.ne.s32.totalorder %s2142_s3, %s1475_s24  ;;  %s431_s18 = int_to_ptr.vmem [resolvable:$true] %s430_s18 }
  0xaa   : > { %p2203_p2 = scmp.ne.s32.totalorder %s2196_s28, 0  ;;  %p1482_p13 = scmp.lt.u32.totalorder %s1475_s24, %s1475_s24 }
  0xab   : > { %p1484_p5 = scmp.lt.u32.totalorder %s1475_s24, %s2142_s3 }
  0xac   : > { %p1478_p6 = pnand %p1476_p12, %p2203_p2 }
  0xad   : > { %p1485_p9 = por %p1484_p5, %p1482_p13 }
  0xae   : > { %p1479_p11 = pneg %p1478_p6 }
  0xb0   : > { %p1486_p0 = pnand %p1485_p9, %p1479_p11 }
  0xb2   : > { %1489 = shalt.err (!%p1486_p0)
}
  0xb3   : > { %s1490_s11 = scalar_lea.vmem %s431_s18, 128  ;;  %s1497_s9 = scalar_lea.vmem %s431_s18, 256 }
  0xb4   : > { %p1491_p8 = scmp.ne.s32.totalorder %s431_s18, %s1490_s11  ;;  %p1498_p4 = scmp.lt.s32.totalorder %s431_s18, %s431_s18 }
  0xb5   : > { %p1499_p3 = scmp.lt.s32.totalorder %s1497_s9, %s1490_s11 }
  0xb6   : > { %p1493_p10 = pnand %p1491_p8, %p2203_p2 }
  0xb7   : > { %p1500_p7 = por %p1499_p3, %p1498_p4 }
  0xb8   : > { %p1494_p1 = pneg %p1493_p10 }
  0xba   : > { %p1501_p12 = pnand %p1500_p7, %p1494_p1 }
  0xbc   : > { %1504 = shalt.err (!%p1501_p12)
}
  0xbd   : > { %p2204_p6 = scmp.ne.s32.totalorder %s2195_s21, 0  ;;  %s1505_s25 = scalar_lea.hbm %s2147_s8, 256 }
  0xbe   : > { %p1506_p11 = scmp.ne.s32.totalorder %s2147_s8, %s1505_s25  ;;  %p1512_p9 = scmp.lt.u32.totalorder %s1505_s25, %s1505_s25 }
  0xbf   : > { %1217 = dma.hbm_to_vmem [thread:$0]  (!%p2204_p6), %s2142_s3, 128, %s431_s18, %s1885_s27  }
  0xc0   : > { %p1508_p13 = pnand %p1506_p11, %p2203_p2  ;;  %p1514_p0 = scmp.lt.u32.totalorder %s1505_s25, %s2147_s8 }
  0xc2   : > { %p1509_p5 = pneg %p1508_p13  ;;  %p1515_p8 = por %p1514_p0, %p1512_p9 }
  0xc4   : > { %p1516_p10 = pnand %p1515_p8, %p1509_p5 }
  0xc6   : > { %1519 = shalt.err (!%p1516_p10)
}
  0xc7   : > { %s1520_s27 = scalar_lea.vmem %s1881_s12, 256  ;;  %s1527_s18 = scalar_lea.vmem %s1881_s12, 512 }
  0xc8   : > { %p1521_p1 = scmp.ne.s32.totalorder %s1881_s12, %s1520_s27  ;;  %p1528_p7 = scmp.lt.s32.totalorder %s1881_s12, %s1881_s12 }
  0xc9   : > { %p1529_p12 = scmp.lt.s32.totalorder %s1527_s18, %s1520_s27 }
  0xca   : > { %p1523_p4 = pnand %p1521_p1, %p2203_p2 }
  0xcb   : > { %p1530_p11 = por %p1529_p12, %p1528_p7 }
  0xcc   : > { %p1524_p3 = pneg %p1523_p4 }
  0xce   : > { %p1531_p13 = pnand %p1530_p11, %p1524_p3 }
  0xd0   : > { %1534 = shalt.err (!%p1531_p13)
}
  0xd1   : > { %s2205_s26 = smov 8   ;;  %s2206_s19 = smov 128  }
  0xd2   : > { %1223 = dma.hbm_to_vmem [thread:$0]  (!%p2204_p6), %s2147_s8, 256, %s1881_s12, %s1854_s29, %s2206_s19, %s2206_s19, %s2205_s26  }
  0xd3   : > { %p2207_p2 = scmp.ne.s32.totalorder %s2188_s23, 0 }
  0xd4   : > { %p2208_p5 = scmp.eq.s32.totalorder (!%p2207_p2), %s1767_s17, 0 }
  0xd5   : > { %499 = sbr.rel (%p2207_p2) target bundleno = 712 (0x2c8), region = 56 }
  0xdc   : > { %1600 = dma.done.wait (%p2208_p5), [#allocation8], 16   ;;  %p2209_p9 = pmov %p2208_p5 }
  0xdd   : > { %s505_s21 = sand.u32 1, %s1767_s17   ;;  %s507_s28 = sand.u32 1, %s1650_s13  }
  0xde   : > { %1602 = vsyncadd (%p2209_p9), [#allocation8], 4294967280  ;;  %s2014_s15 = sshll.u32 %s507_s28, 3  ;;  %s506_s14 = scalar_lea.sflag [#allocation6], %s505_s21 }
  0xdf   : > { %s509_s10 = scalar_lea.vmem [#allocation9], %s2014_s15  ;;  %p2210_p6 = scmp.ne.s32.totalorder %s2183_s20, 0 }
  0xe1   : > { %1604 = dma.done.wait (%p2210_p6), %s506_s14, 128  }
  0xe2   : > { %1606 = vsyncadd (%p2210_p6), %s506_s14, 4294967168  ;;  %s515_s23 = scalar_lea.sflag [#allocation11], %s505_s21  ;;  %s518_s29 = scalar_lea.vmem [#allocation10], %s2014_s15 }
  0xe3   : > { %1608 = dma.done.wait (%p2210_p6), %s515_s23, 256  }
  0xe4   : > { %1610 = vsyncadd (%p2210_p6), %s515_s23, 4294967040  ;;  %s527_s12 = scalar_lea.vmem [#allocation12], %s2014_s15  ;;  %p2211_p0 = pmov %p2208_p5 }
  0xe6   : > { %1612 = dma.done.wait (%p2211_p0), [#allocation14], 128   ;;  %p2212_p8 = pmov %p2211_p0 }
  0xe7   : > { %s540_s6 = scalar_lea.vmem [#allocation15], %s2014_s15 }
  0xe8   : > { %1614 = vsyncadd (%p2212_p8), [#allocation14], 4294967168 }
  0xe9   : > { %1616 = dma.done.wait (%p2210_p6), %s506_s14, 128  }
  0xea   : > { %1618 = vsyncadd (%p2210_p6), %s506_s14, 4294967168  ;;  %p2213_p10 = pmov %p2211_p0 }
  0xeb   : > { %p2214_p1 = pmov %p2211_p0 }
  0xec   : > { %1620 = dma.done.wait (%p2213_p10), [#allocation11], 256  }
  0xed   : > { %1622 = vsyncadd (%p2214_p1), [#allocation11], 4294967040  ;;  %s2040_s25 = sshll.u32 %s507_s28, 4 }
  0xee   : > { %s553_s22 = scalar_lea.vmem [#allocation17], %s2040_s25 }
  0xef   : > { %1624 = dma.done.wait (%p2210_p6), %s506_s14, 256  }
  0xf0   : > { %1626 = vsyncadd (%p2210_p6), %s506_s14, 4294967040 }
  0xf1   : > { %558 = sfence }
  0xf2   : > { %s2215_s24 = sld [smem:[#allocation28_spill]]  ;;  %s2216_s30 = sld [smem:[#allocation30_spill]]  ;;  %vm650_vm0 = vcmask 130048   ;;  %v1674_v0 = vmov 0.0  }
  0xf3   : > { %651 = vst.msk [vmem:[#allocation2] sm:$0xff] %vm650_vm0, %v1674_v0  ;;  %652 = vst [vmem:[#allocation3] sm:$0xff] %v1674_v0  ;;  %s2217_s11 = sld [smem:[#allocation36_spill]] }
  0xf4   : > { %653 = vst [vmem:[#allocation4] sm:$0xff] %v1674_v0  ;;  %654 = vst [vmem:[#allocation4 + $0x8] sm:$0xff] %v1674_v0 }
  0xf8   : > { %s614_s7 = sand.u32 1, %s2215_s24   ;;  %p630_p4 = scmp.lt.s32.totalorder %s2216_s30, 0 }
  0xf9   : > { %s2051_s17 = sshll.u32 %s614_s7, 3  ;;  %p1136_p7 = scmp.ge.s32.totalorder %s2216_s30, 1 }
  0xfa   : > { %s631_s20 = scalar_select %p630_p4, %s2216_s30, 0 }
  0xfb   : > { %s616_s21 = scalar_lea.vmem [#allocation18], %s2051_s17  ;;  %658 = sbr.rel (%p1136_p7) target bundleno = 478 (0x1de), region = 96  ;;  %v750_v1 = vld [vmem:[#allocation16] sm:$0xff] (!%p1136_p7)  ;;  %v751_v2 = vld [vmem:[#allocation16 + $0x8] sm:$0xff] (!%p1136_p7)  ;;  %v1675_v6 = vmov (!%p1136_p7), 0.0   ;;  %vm1676_vm1 = vmmov (!%p1136_p7), 0  }
  0xfc   : > { %s1134_s27 = sshll.u32 %s631_s20, 1  ;;  %v659_v3 = vld [vmem:[%s509_s10] sm:$0xff] (!%p1136_p7)  ;;  %v1164_v4 = vpack.c.bf16 (!%p1136_p7), %v751_v2, %v750_v1  ;;  %v660_v5 = vld [vmem:[%s518_s29] sm:$0xff] (!%p1136_p7)  ;;  %1152 = vmatprep.subr.mxu0 (!%p1136_p7), %v1675_v6  ;;  %1154 = vmatprep.mubr.msk.f32.mxu0 (!%p1136_p7), %vm1676_vm1, %v1675_v6  ;;  %vm669_vm2 = vcmask (!%p1136_p7), 64512   ;;  %v743_v15 = vld [vmem:[%s540_s6] sm:$0xff] (!%p1136_p7) }
  0xfd   : > { %p633_p3 = scmp.lt.s32.totalorder %s1134_s27, 1  ;;  %v668_v7 = vld [vmem:[#allocation13] sm:$0xff] (!%p1136_p7)  ;;  %v661_v8 = vsub.f32 (!%p1136_p7), %v659_v3, %v660_v5  ;;  %v667_v10 = vld [vmem:[%s527_s12] sm:$0xff] (!%p1136_p7)  ;;  %v838_v24 = vld [vmem:[#allocation4 + $0x8] sm:$0xff] (!%p1136_p7) }
  0xfe   : > { %1153 = vmatpush3.msra.mxu0 (!%p1136_p7), %v668_v7  ;;  %1165 = vmatprep.subr.bf16.mxu1 (!%p1136_p7), %v1164_v4  ;;  %v663_v11 = vld [vmem:[#allocation2] sm:$0xff] (!%p1136_p7)  ;;  %v745_v17 = vld [vmem:[#allocation3] sm:$0xff] (!%p1136_p7)  ;;  %v837_v27 = vld [vmem:[#allocation4] sm:$0xff] (!%p1136_p7) }
  0xff   : > { %s2236_s27 = smov (!%p633_p3, %s1134_s27), 1  ;;  %1167 = vmatpush3.bf16.msra.mxu1 (!%p1136_p7), %v1164_v4  ;;  %v662_v12 = vmul.f32 (!%p1136_p7), %v661_v8, %v661_v8  ;;  %1155 = vmatmul.mubr.msk.f32.vlgmr.msra.gmra.mrb[0].mxu0 (!%p1136_p7), %vm669_vm2, %v667_v10  ;;  %v834_v19 = vld [vmem:[%s553_s22 + $0x8] sm:$0xff] (!%p1136_p7)  ;;  %v833_v21 = vld [vmem:[%s553_s22] sm:$0xff] (!%p1136_p7) }
 0x100   : > { %s1135_s18 = sshll.u32 %s2236_s27, 3 }
 0x101   : > { %s636_s9 = scalar_lea.vmem %s2217_s11, %s1135_s18  ;;  %v664_v14 = vadd.f32 (!%p1136_p7), %v663_v11, %v662_v12 }
 0x102   : > { %v748_v9 = vld [vmem:[%s636_s9] sm:$0xff]  ;;  %v749_v13 = vld [vmem:[%s636_s9 + $0x8] sm:$0xff] }
 0x103   : > { %1161 = vmatprep.mubr.msk.f32.mxu1 %vm650_vm0, %v748_v9  ;;  %666 = vst.msk [vmem:[#allocation2] sm:$0xff] %vm650_vm0, %v664_v14 }
 0x104   : > { %1162 = vmatmul.mubr.msk.f32.vlgmr.msra.gmra.mrb[0].mxu1 %vm650_vm0, %v749_v13 }
 0x1d2   : > { %v739_v16 = vpop.f32.mrb[0].mxu0 }
 0x1d3   : > { %v744_v18 = vmul.f32 %v743_v15, %v739_v16  ;;  %v1156_v20 = vpop.f32.mrb[1].mxu0 }
 0x1d5   : > { %v746_v22 = vadd.f32 %v745_v17, %v744_v18 }
 0x1d7   : > { %v1163_v23 = vpop.f32.mrb[0].mxu1  ;;  %747 = vst [vmem:[#allocation3] sm:$0xff] %v746_v22 }
 0x1d8   : > { %v836_v25 = vmul.f32 %v1163_v23, %v834_v19  ;;  %v824_v26 = vpop.f32.mrb[1].mxu1 }
 0x1d9   : > { %v835_v28 = vmul.f32 %v833_v21, %v824_v26 }
 0x1da   : > { %v840_v29 = vadd.f32 %v838_v24, %v836_v25 }
 0x1db   : > { %v839_v30 = vadd.f32 %v837_v27, %v835_v28 }
 0x1dc   : > { %842 = vst [vmem:[#allocation4 + $0x8] sm:$0xff] %v840_v29 }
 0x1dd   : > { %841 = vst [vmem:[#allocation4] sm:$0xff] %v839_v30 }
 0x1de PF: > { %v846_v31 = vld [vmem:[#allocation2] sm:$0xff]  ;;  %v859_v36 = vld [vmem:[#allocation3] sm:$0xff]  ;;  %s2218_s28 = sld [smem:[#allocation30_spill]]  ;;  %s858_s14 = sld [smem:[#allocation5]] }
 0x1df   : > { %v848_v34 = vsel %vm650_vm0, %v846_v31, 0.0  ;;  %s1140_s10 = sld [smem:[#allocation5 + $0x1]]  ;;  %s2220_s29 = sld [smem:[#allocation32_spill]] }
 0x1e0   : > { %849 = vadd.xlane.f32.xlu0 %v848_v34  ;;  %s902_s24 = sshll.u32 %s616_s21, 4  ;;  %s2221_s19 = sld [smem:[#allocation38_spill]]  ;;  %s2084_s24 = int_to_ptr.vmem [resolvable:$true] %s902_s24 }
 0x1e1   : > { %s889_s9 = scalar_lea.sflag [#allocation7], %s614_s7 }
 0x1e3   : > { %v873_v33 = vld [vmem:[#allocation4 + $0x8] sm:$0xff] }
 0x1e4   : > { %v872_v32 = vld [vmem:[#allocation4] sm:$0xff]  ;;  %860 = vadd.xlane.f32.xlu0 %v859_v36  ;;  %s1142_s22 = sshll.u32 %s2218_s28, 7  ;;  %s1535_s28 = scalar_lea.vmem %s2084_s24, 128 }
 0x1e5   : > { %v874_v35 = vadd.f32 %v873_v33, %v872_v32  ;;  %p1536_p12 = scmp.ne.s32.totalorder %s2084_s24, %s1535_s28  ;;  %p2222_p11 = scmp.ne.s32.totalorder %s2220_s29, 0 }
 0x1e6   : > { %s2082_s11 = scalar_lea.hbm %s2221_s19, %s1142_s22 }
 0x1e7   : > { %875 = vadd.xlane.f32.xlu1 %v874_v35  ;;  %p1537_p13 = pnand %p1536_p12, %p2222_p11 }
 0x1e9   : > { %p1538_p2 = pneg %p1537_p13 }
 0x26d   : > { %v850_v37 = vpop.xlane.xlu0 %849 }
 0x26e   : > { %v851_v38 = vrot.slane %v850_v37, 4 }
 0x270   : > { %v852_v41 = vadd.f32 %v851_v38, %v850_v37 }
 0x271   : > { %v861_v43 = vpop.xlane.xlu0 %860 }
 0x272   : > { %v853_v44 = vrot.slane %v852_v41, 2  ;;  %v862_v45 = vrot.slane %v861_v43, 4 }
 0x274   : > { %v876_v39 = vpop.xlane.xlu1 %875  ;;  %v863_v47 = vadd.f32 %v862_v45, %v861_v43  ;;  %v854_v48 = vadd.f32 %v853_v44, %v852_v41 }
 0x275   : > { %v877_v40 = vrot.slane %v876_v39, 4 }
 0x276   : > { %v864_v50 = vrot.slane %v863_v47, 2  ;;  %v855_v51 = vrot.slane %v854_v48, 1 }
 0x277   : > { %v878_v42 = vadd.f32 %v877_v40, %v876_v39 }
 0x278   : > { %v865_v52 = vadd.f32 %v864_v50, %v863_v47  ;;  %v856_v53 = vadd.f32 %v855_v51, %v854_v48 }
 0x279   : > { %v879_v46 = vrot.slane %v878_v42, 2 }
 0x27a   : > { %1168 = vpush %v856_v53  ;;  %v866_v55 = vrot.slane %v865_v52, 1 }
 0x27b   : > { %v880_v49 = vadd.f32 %v879_v46, %v878_v42 }
 0x27c   : > { %v867_v56 = vadd.f32 %v866_v55, %v865_v52 }
 0x27d   : > { %v881_v54 = vrot.slane %v880_v49, 1 }
 0x27e   : > { %1170 = vpush %v867_v56 }
 0x27f   : > { %v882_v57 = vadd.f32 %v881_v54, %v880_v49 }
 0x281   : > { %1172 = vpush %v882_v57 }
 0x2ab   : > { %s1169_s23 = spop %1168 }
 0x2af   : > { %s1171_s12 = spop %1170 }
 0x2b0   : > { %s869_s6 = smul.f32 %s1171_s12, %s858_s14  ;;  %s1677_s14 = smov [#allocation18]  }
 0x2b2   : > { %s1173_s25 = spop %1172  ;;  %s870_s30 = sadd.f32 %s1169_s23, %s869_s6 }
 0x2b3   : > { %s884_s20 = smul.f32 %s1173_s25, %s1140_s10  ;;  %s1539_s10 = sshll.u32 %s1677_s14, 4  ;;  %s1540_s10 = int_to_ptr.vmem [resolvable:$false] %s1539_s10 }
 0x2b4   : > { %s1541_s23 = scalar_lea.vmem %s1540_s10, 256  ;;  %p1542_p5 = scmp.lt.s32.totalorder %s2084_s24, %s1540_s10 }
 0x2b5   : > { %s885_s27 = sadd.f32 %s884_s20, %s870_s30  ;;  %p1543_p9 = scmp.lt.s32.totalorder %s1541_s23, %s1535_s28 }
 0x2b7   : > { %v886_v58 = vstv %s885_s27  ;;  %p1544_p6 = por %p1543_p9, %p1542_p5 }
 0x2b8   : > { %887 = vst [vmem:[%s616_s21] sm:$0xff] %v886_v58 }
 0x2b9   : > { %p1545_p0 = pnand %p1544_p6, %p1538_p2 }
 0x2bb   : > { %1548 = shalt.err (!%p1545_p0)
}
 0x2bc   : > { %s1549_s7 = scalar_lea.hbm %s2082_s11, 128  ;;  %s1553_s15 = scalar_lea.hbm %s2221_s19, 256 }
 0x2bd   : > { %p1550_p8 = scmp.ne.s32.totalorder %s2082_s11, %s1549_s7  ;;  %p1554_p4 = scmp.lt.u32.totalorder %s2082_s11, %s2221_s19 }
 0x2be   : > { %p1555_p3 = scmp.lt.u32.totalorder %s1553_s15, %s1549_s7  ;;  %p1557_p12 = scmp.lt.u32.totalorder %s1549_s7, %s2082_s11 }
 0x2bf   : > { %p1551_p10 = pnand %p1550_p8, %p2222_p11 }
 0x2c0   : > { %p1556_p7 = por %p1555_p3, %p1554_p4 }
 0x2c1   : > { %p1552_p1 = pneg %p1551_p10 }
 0x2c2   : > { %p1558_p13 = por %p1557_p12, %p1556_p7 }
 0x2c4   : > { %p1559_p2 = pnand %p1558_p13, %p1552_p1 }
 0x2c6   : > { %1562 = shalt.err (!%p1559_p2)
}
 0x2c7   : > { %1196 = dma.vmem_to_hbm [thread:$0]  (%p2222_p11), %s2084_s24, 128, %s2082_s11, %s889_s9  }
 0x2c8 PF: > { %s2223_s25 = sld [smem:[#allocation27_spill]]  ;;  %s2224_s22 = sld [smem:[#allocation33_spill]] }
 0x2c9   : > { %p2226_p9 = scmp.ge.s32.totalorder %s1662_s16, 2 }
 0x2ce   : > { %s914_s30 = sand.u32 1, %s2223_s25   ;;  %p2225_p5 = scmp.ne.s32.totalorder %s2224_s22, 0 }
 0x2cf   : > { %s915_s20 = scalar_lea.sflag [#allocation7], %s914_s30 }
 0x2d0   : > { %p1225_p6 = pnand %p2226_p9, %p2225_p5 }
 0x2d2   : > { %1628 = dma.done.wait (!%p1225_p6), %s915_s20, 128  }
 0x2d3   : > { %1630 = vsyncadd (!%p1225_p6), %s915_s20, 4294967168  ;;  %s30_s16 = sadd.s32 1, %s1662_s16   ;;  %s2227_s30 = sld [smem:[#allocation28_spill]] }
 0x2d4   : > { %p27_p0 = scmp.ge.s32.totalorder %s30_s16, 4   ;;  %s2228_s10 = sld [smem:[#allocation29_spill]] }
 0x2d5   : > { %s2229_s11 = sld [smem:[#allocation35_spill]]  ;;  %s2230_s14 = sld [smem:[#allocation31_spill]] }
 0x2d6   : > { %s2231_s15 = sld [smem:[#allocation34_spill]]  ;;  %s2232_s12 = smov %s1650_s13 }
 0x2d7   : > { %s2129_s13 = smov 0   ;;  %29 = sbr.rel (!%p27_p0) target bundleno = 15 (0xf), region = 175 }
 0x2de   :  { %920 = vsyncpa [#allocation6], 1 }
 0x2df   :  { %922 = vsyncpa [#allocation6 + $0x1], 1 }
 0x2e0   :  { %923 = vsyncpa [#allocation11], 1 }
 0x2e1   :  { %925 = vsyncpa [#allocation11 + $0x1], 1 }
 0x2e2   :  { %926 = vsyncpa [#allocation14], 1 }
 0x2e3   :  { %927 = vsyncpa [#allocation7], 1 }
 0x2e4   :  { %929 = vsyncpa [#allocation7 + $0x1], 1 }
 0x2e5   :  { %930 = vsyncpa [#allocation8], 1 }
 0x2e6   :  { %932 = vsyncpa [#allocation8 + $0x1], 1 }

// kernel: tpu_custom_call.1
= control target key start
LH: loop header
LB: loop body
LE: loop exit
PB: predicated region body
PF: predicated region fallthrough
CT: control target
= control target key end

     0   :  { %s2139_s0 = inlined_call_operand.hbm [shape: f32[2], index: 0, kind: input, shape index: {}]   ;;  %s2140_s1 = inlined_call_operand.hbm [shape: f32[8,16], index: 1, kind: input, shape index: {}]   ;;  %s2141_s2 = inlined_call_operand.hbm [shape: f32[8,16], index: 2, kind: input, shape index: {}]   ;;  %s2142_s3 = inlined_call_operand.hbm [shape: f32[8,8], index: 3, kind: input, shape index: {}]   ;;  %s2143_s4 = inlined_call_operand.hbm [shape: f32[8,128], index: 4, kind: input, shape index: {}]   ;;  %s2144_s5 = inlined_call_operand.hbm [shape: f32[8,128], index: 5, kind: input, shape index: {}]   ;;  %s2145_s6 = inlined_call_operand.vmem [shape: f32[16,16], index: 6, kind: input, shape index: {}]   ;;  %s2146_s7 = inlined_call_operand.hbm [shape: f32[16,128], index: 7, kind: input, shape index: {}]   ;;  %s2147_s8 = inlined_call_operand.hbm [shape: f32[16,128], index: 8, kind: input, shape index: {}]   ;;  %s2148_s9 = inlined_call_operand.hbm [shape: f32[2,8,128], index: 9, kind: output, shape index: {}]  }
   0x1   :  { %2175 = sst [smem:[#allocation36_spill]] %s2145_s6 }
   0x2   :  { %2176 = sst [smem:[#allocation37_spill]] %s2146_s7 }
   0x3   :  { %2177 = sst [smem:[#allocation38_spill]] %s2148_s9 }
   0x4   :  { %14 = vsyncpa [#allocation8], 0 }
   0x5   :  { %15 = vsyncpa [#allocation6], 0 }
   0x6   :  { %17 = vsyncpa [#allocation6 + $0x1], 0 }
   0x7   :  { %18 = vsyncpa [#allocation11], 0 }
   0x8   :  { %20 = vsyncpa [#allocation11 + $0x1], 0 }
   0x9   :  { %21 = vsyncpa [#allocation14], 0 }
   0xa   :  { %22 = vsyncpa [#allocation7], 0 }
   0xb   :  { %24 = vsyncpa [#allocation7 + $0x1], 0  ;;  %s1728_s30 = smov 0   ;;  %s1730_s10 = smov 0  }
   0xc   :  { %s1732_s11 = smov 0   ;;  %s1734_s12 = smov 0  }
   0xd   :  { %s1736_s13 = smov 0   ;;  %s1738_s14 = smov 0  }
   0xe   :  { %s1740_s15 = smov 0   ;;  %s1742_s16 = smov 0  }
   0xf LB: > { %2178 = sst [smem:[#allocation27_spill]] %s1634_s30  ;;  %s1767_s17 = sadd.s32 4294967295, %s1662_s16   ;;  %s1662_s16 = sphi %s1742_s16, %s30_s16   ;;  %s1658_s15 = sphi %s1740_s15, %s2231_s15   ;;  %s1654_s14 = sphi %s1738_s14, %s2230_s14   ;;  %s1650_s13 = sphi %s1736_s13, %s2129_s13   ;;  %s1646_s12 = sphi %s1734_s12, %s2232_s12   ;;  %s1642_s11 = sphi %s1732_s11, %s2229_s11   ;;  %s1638_s10 = sphi %s1730_s10, %s2228_s10   ;;  %s1634_s30 = sphi %s1728_s30, %s2227_s30  }
  0x10   : > { %2179 = sst [smem:[#allocation28_spill]] %s1638_s10  ;;  %s1107_s18 = sadd.s32 4294967294, %s1662_s16  }
  0x11   : > { %2180 = sst [smem:[#allocation29_spill]] %s1642_s11  ;;  %p89_p0 = scmp.ne.s32.totalorder %s1650_s13, %s1646_s12 }
  0x12   : > { %2181 = sst [smem:[#allocation30_spill]] %s1654_s14  ;;  %p2151_p1 = scmp.eq.s32.totalorder %s1767_s17, 0 }
  0x13   : > { %2182 = sst [smem:[#allocation31_spill]] %s1658_s15  ;;  %p314_p2 = scmp.ne.s32.totalorder %s1642_s11, %s1638_s10 }
  0x14   : > { %p1777_p3 = por %p2151_p1, %p89_p0  ;;  %p315_p4 = scmp.eq.s32.totalorder %s1767_s17, 1 }
  0x15   : > { %p320_p5 = scmp.ne.s32.totalorder %s1638_s10, %s1634_s30  ;;  %p321_p6 = scmp.eq.s32.totalorder %s1107_s18, 1 }
  0x16   : > { %s2183_s20 = scalar_select %p1777_p3, 1, 0 }
  0x17   : > { %p1784_p7 = por %p315_p4, %p314_p2  ;;  %p1108_p8 = scmp.ge.s32.totalorder %s1662_s16, 1 }
  0x18   : > { %p1789_p9 = por %p321_p6, %p320_p5  ;;  %p328_p10 = scmp.lt.s32.totalorder %s1662_s16, 3 }
  0x19   : > { %s2184_s21 = scalar_select %p1784_p7, 1, 0 }
  0x1a   : > { %s2186_s22 = scalar_select %p1789_p9, 1, 0 }
  0x1b   : > { %2185 = sst [smem:[#allocation32_spill]] %s2184_s21  ;;  %p1794_p11 = pnand %p1108_p8, %p328_p10 }
  0x1c   : > { %2187 = sst [smem:[#allocation33_spill]] %s2186_s22  ;;  %s1664_s24 = smov [#allocation16]  }
  0x1d   : > { %s2188_s23 = scalar_select %p1794_p11, 1, 0 }
  0x1e   : > { %s360_s25 = sshll.u32 %s1664_s24, 4  ;;  %p1198_p12 = pneg %p1794_p11  ;;  %s361_s25 = int_to_ptr.vmem [resolvable:$true] %s360_s25 }
  0x1f   : > { %s42_s27 = sadd.s32 1, %s1658_s15  ;;  %s2190_s7 = sld [smem:[#allocation37_spill]] }
  0x20   : > { %p1803_p0 = pnand %p1198_p12, %p2151_p1 }
  0x22   : > { %s2189_s26 = scalar_select %p1803_p0, 1, 0 }
  0x23   : > { %p1816_p4 = pneg %p1803_p0 }
  0x25   : > { %s1316_s12 = scalar_lea.hbm %s2190_s7, 256 }
  0x26   : > { %p1317_p2 = scmp.ne.s32.totalorder %s2190_s7, %s1316_s12  ;;  %p1323_p8 = scmp.lt.u32.totalorder %s1316_s12, %s2190_s7 }
  0x27   : > { %s2191_s24 = scalar_select %p1816_p4, 1, 0 }
  0x28   : > { %p1319_p5 = pnand %p1816_p4, %p1317_p2 }
  0x2a   : > { %p1320_p6 = pneg %p1319_p5 }
  0x2c   : > { %p1325_p10 = pnand %p1323_p8, %p1320_p6 }
  0x2e   : > { %1328 = shalt.err (!%p1325_p10)
}
  0x2f   : > { %s1329_s28 = scalar_lea.vmem %s361_s25, 256  ;;  %p1337_p9 = scmp.lt.s32.totalorder %s361_s25, %s361_s25 }
  0x30   : > { %p1330_p12 = scmp.ne.s32.totalorder %s361_s25, %s1329_s28  ;;  %p1338_p7 = scmp.lt.s32.totalorder %s1329_s28, %s1329_s28 }
  0x32   : > { %p1332_p13 = pnand %p1330_p12, %p1816_p4  ;;  %p1339_p3 = por %p1338_p7, %p1337_p9 }
  0x34   : > { %p1333_p1 = pneg %p1332_p13 }
  0x36   : > { %p1340_p11 = pnand %p1339_p3, %p1333_p1 }
  0x38   : > { %1343 = shalt.err (!%p1340_p11)
}
  0x39   : > { %s2158_s19 = smov 128   ;;  %s2159_s30 = smov 8  }
  0x3a   : > { %1207 = dma.hbm_to_vmem [thread:$0]  (!%p1803_p0), %s2190_s7, 256, %s361_s25, [#allocation11], %s2158_s19, %s2158_s19, %s2159_s30  }
  0x3b   : > { %p44_p1 = scmp.ge.s32.totalorder %s42_s27, 2  ;;  %p1631_p3 = scmp.ne.s32.totalorder %s1650_s13, 0 }
  0x3c   : > { %p84_p7 = scmp.eq.s32.totalorder %s1662_s16, 0  ;;  %p1231_p9 = scmp.lt.s32.totalorder %s1662_s16, 2 }
  0x3d   : > { %s2234_s27 = smov (%p44_p1, %s42_s27), 0  ;;  %s2161_s18 = sand.u32 1, %s1662_s16  }
  0x3e   : > { %2192 = sst [smem:[#allocation34_spill]] %s2234_s27  ;;  %s301_s12 = ssub.s32 %s1658_s15, %s2234_s27 }
  0x3f   : > { %p85_p11 = por %p1631_p3, %p84_p7  ;;  %p302_p13 = scmp.eq.s32.totalorder %s301_s12, 0 }
  0x40   : > { %s2193_s28 = sadd.s32 1, %s1642_s11  ;;  %s1667_s25 = smov [#allocation9]  }
  0x41   : > { %s1846_s9 = scalar_select %p302_p13, %s1642_s11, %s2193_s28  }
  0x42   : > { %p1848_p2 = pnand %p1231_p9, %p85_p11  ;;  %s388_s22 = sshll.u32 %s1667_s25, 4  ;;  %s389_s22 = int_to_ptr.vmem [resolvable:$true] %s388_s22 }
  0x43   : > { %2194 = sst [smem:[#allocation35_spill]] %s1846_s9  ;;  %s1854_s29 = scalar_lea.sflag [#allocation6], %s2161_s18 }
  0x44   : > { %s2195_s21 = scalar_select %p1848_p2, 1, 0 }
  0x45   : > { %s1344_s7 = scalar_lea.hbm %s2140_s1, 128  ;;  %p1864_p6 = pneg %p1848_p2 }
  0x46   : > { %p1345_p5 = scmp.ne.s32.totalorder %s2140_s1, %s1344_s7  ;;  %p1351_p12 = scmp.lt.u32.totalorder %s1344_s7, %s1344_s7 }
  0x47   : > { %s2196_s28 = scalar_select %p1864_p6, 1, 0 }
  0x48   : > { %p1347_p8 = pnand %p1864_p6, %p1345_p5  ;;  %p1353_p1 = scmp.lt.u32.totalorder %s1344_s7, %s2140_s1 }
  0x4a   : > { %p1348_p10 = pneg %p1347_p8  ;;  %p1354_p3 = por %p1353_p1, %p1351_p12 }
  0x4c   : > { %p1355_p7 = pnand %p1354_p3, %p1348_p10 }
  0x4e   : > { %1358 = shalt.err (!%p1355_p7)
}
  0x4f   : > { %s1359_s19 = scalar_lea.vmem %s389_s22, 128  ;;  %s1366_s27 = scalar_lea.vmem %s389_s22, 256 }
  0x50   : > { %p1360_p9 = scmp.ne.s32.totalorder %s389_s22, %s1359_s19  ;;  %p1367_p0 = scmp.lt.s32.totalorder %s389_s22, %s389_s22 }
  0x51   : > { %p1368_p4 = scmp.lt.s32.totalorder %s1366_s27, %s1359_s19 }
  0x52   : > { %p1362_p11 = pnand %p1360_p9, %p1864_p6 }
  0x53   : > { %p1369_p2 = por %p1368_p4, %p1367_p0 }
  0x54   : > { %p1363_p13 = pneg %p1362_p11 }
  0x56   : > { %p1370_p5 = pnand %p1369_p2, %p1363_p13 }
  0x58   : > { %1373 = shalt.err (!%p1370_p5)
}
  0x59   : > { %p2197_p8 = scmp.ne.s32.totalorder %s2195_s21, 0  ;;  %s1668_s18 = smov [#allocation17]  }
  0x5a   : > { %s487_s12 = sshll.u32 %s1668_s18, 4  ;;  %s1669_s25 = smov [#allocation10]   ;;  %s1881_s12 = int_to_ptr.vmem [resolvable:$true] %s487_s12 }
  0x5b   : > { %1211 = dma.hbm_to_vmem [thread:$0]  (!%p2197_p8), %s2140_s1, 128, %s389_s22, %s1854_s29  }
  0x5c   : > { %s409_s15 = sshll.u32 %s1669_s25, 4  ;;  %s2198_s19 = sand.u32 1, %s1662_s16   ;;  %s410_s15 = int_to_ptr.vmem [resolvable:$true] %s409_s15 }
  0x5d   : > { %s1885_s27 = scalar_lea.sflag [#allocation11], %s2198_s19  ;;  %s1374_s6 = scalar_lea.hbm %s2141_s2, 128 }
  0x5e   : > { %p1375_p0 = scmp.ne.s32.totalorder %s2141_s2, %s1374_s6  ;;  %p1381_p10 = scmp.lt.u32.totalorder %s1374_s6, %s1374_s6 }
  0x5f   : > { %p1383_p12 = scmp.lt.u32.totalorder %s1374_s6, %s2141_s2 }
  0x60   : > { %p1377_p4 = pnand %p1375_p0, %p1864_p6 }
  0x61   : > { %p1384_p1 = por %p1383_p12, %p1381_p10 }
  0x62   : > { %p1378_p2 = pneg %p1377_p4 }
  0x64   : > { %p1385_p3 = pnand %p1384_p1, %p1378_p2 }
  0x66   : > { %1388 = shalt.err (!%p1385_p3)
}
  0x67   : > { %s1389_s7 = scalar_lea.vmem %s410_s15, 128  ;;  %s1396_s9 = scalar_lea.vmem %s410_s15, 256 }
  0x68   : > { %p1390_p7 = scmp.ne.s32.totalorder %s410_s15, %s1389_s7  ;;  %p1397_p13 = scmp.lt.s32.totalorder %s410_s15, %s410_s15 }
  0x69   : > { %p1398_p5 = scmp.lt.s32.totalorder %s1396_s9, %s1389_s7 }
  0x6a   : > { %p1392_p9 = pnand %p1390_p7, %p1864_p6 }
  0x6b   : > { %p1399_p8 = por %p1398_p5, %p1397_p13 }
  0x6c   : > { %p1393_p11 = pneg %p1392_p9 }
  0x6e   : > { %p1400_p0 = pnand %p1399_p8, %p1393_p11 }
  0x70   : > { %1403 = shalt.err (!%p1400_p0)
}
  0x71   : > { %p2199_p4 = scmp.ne.s32.totalorder %s2195_s21, 0  ;;  %s1670_s11 = smov [#allocation15]  }
  0x72   : > { %s451_s14 = sshll.u32 %s1670_s11, 4  ;;  %s1404_s19 = scalar_lea.hbm %s2144_s5, 128  ;;  %s452_s14 = int_to_ptr.vmem [resolvable:$true] %s451_s14 }
  0x73   : > { %1214 = dma.hbm_to_vmem [thread:$0]  (!%p2199_p4), %s2141_s2, 128, %s410_s15, %s1885_s27  }
  0x74   : > { %p1405_p8 = scmp.ne.s32.totalorder %s2144_s5, %s1404_s19  ;;  %p1411_p12 = scmp.lt.u32.totalorder %s1404_s19, %s1404_s19 }
  0x75   : > { %p1413_p1 = scmp.lt.u32.totalorder %s1404_s19, %s2144_s5 }
  0x76   : > { %p1407_p2 = pnand %p1405_p8, %p1864_p6 }
  0x77   : > { %p1414_p3 = por %p1413_p1, %p1411_p12 }
  0x78   : > { %p1408_p10 = pneg %p1407_p2 }
  0x7a   : > { %p1415_p7 = pnand %p1414_p3, %p1408_p10 }
  0x7c   : > { %1418 = shalt.err (!%p1415_p7)
}
  0x7d   : > { %s1419_s15 = scalar_lea.vmem %s452_s14, 128  ;;  %s1426_s10 = scalar_lea.vmem %s452_s14, 256 }
  0x7e   : > { %p1420_p9 = scmp.ne.s32.totalorder %s452_s14, %s1419_s15  ;;  %p1427_p5 = scmp.lt.s32.totalorder %s452_s14, %s452_s14 }
  0x7f   : > { %p1428_p0 = scmp.lt.s32.totalorder %s1426_s10, %s1419_s15 }
  0x80   : > { %p1422_p11 = pnand %p1420_p9, %p1864_p6 }
  0x81   : > { %p1429_p4 = por %p1428_p0, %p1427_p5 }
  0x82   : > { %p1423_p13 = pneg %p1422_p11 }
  0x84   : > { %p1430_p8 = pnand %p1429_p4, %p1423_p13 }
  0x86   : > { %1433 = shalt.err (!%p1430_p8)
}
  0x87   : > { %p2200_p2 = scmp.ne.s32.totalorder %s2195_s21, 0  ;;  %s1434_s19 = scalar_lea.hbm %s2139_s0, 16 }
  0x88   : > { %p1435_p10 = scmp.ne.s32.totalorder %s2139_s0, %s1434_s19  ;;  %p2201_p12 = scmp.ne.s32.totalorder %s2191_s24, 0 }
  0x89   : > { %1220 = dma.hbm_to_vmem [thread:$0]  (!%p2200_p2), %s2144_s5, 128, %s452_s14, %s1854_s29  }
  0x8a   : > { %p1437_p1 = pnand %p1435_p10, %p2201_p12  ;;  %p1441_p3 = scmp.lt.u32.totalorder %s1434_s19, %s2139_s0 }
  0x8c   : > { %p1438_p4 = pneg %p1437_p1 }
  0x8e   : > { %p1443_p7 = pnand %p1441_p3, %p1438_p4 }
  0x90   : > { %1446 = shalt.err (!%p1443_p7)
}
  0x91   : > { %s1671_s15 = smov [#allocation5]   ;;  %p2202_p9 = scmp.ne.s32.totalorder %s2189_s26, 0 }
  0x92   : > { %s1672_s6 = smov [#allocation13]   ;;  %s1447_s22 = scalar_lea.hbm %s2143_s4, 128 }
  0x93   : > { %1201 = dma.hbm_to_smem (!%p2202_p9), %s2139_s0, 16, %s1671_s15, [#allocation8]  }
  0x94   : > { %s350_s11 = sshll.u32 %s1672_s6, 4  ;;  %p1448_p11 = scmp.ne.s32.totalorder %s2143_s4, %s1447_s22  ;;  %s351_s11 = int_to_ptr.vmem [resolvable:$true] %s350_s11 }
  0x95   : > { %p1454_p0 = scmp.lt.u32.totalorder %s1447_s22, %s2143_s4 }
  0x96   : > { %p1450_p13 = pnand %p1448_p11, %p2201_p12 }
  0x98   : > { %p1451_p5 = pneg %p1450_p13 }
  0x9a   : > { %p1456_p8 = pnand %p1454_p0, %p1451_p5 }
  0x9c   : > { %1459 = shalt.err (!%p1456_p8)
}
  0x9d   : > { %s1460_s15 = scalar_lea.vmem %s351_s11, 128  ;;  %p1468_p3 = scmp.lt.s32.totalorder %s351_s11, %s351_s11 }
  0x9e   : > { %p1461_p10 = scmp.ne.s32.totalorder %s351_s11, %s1460_s15  ;;  %p1469_p7 = scmp.lt.s32.totalorder %s1460_s15, %s1460_s15 }
  0xa0   : > { %p1463_p1 = pnand %p1461_p10, %p2201_p12  ;;  %p1470_p2 = por %p1469_p7, %p1468_p3 }
  0xa2   : > { %p1464_p4 = pneg %p1463_p1 }
  0xa4   : > { %p1471_p6 = pnand %p1470_p2, %p1464_p4 }
  0xa6   : > { %1474 = shalt.err (!%p1471_p6)
}
  0xa7   : > { %1204 = dma.hbm_to_vmem [thread:$0]  (!%p2202_p9), %s2143_s4, 128, %s351_s11, [#allocation14]  }
  0xa8   : > { %s1673_s6 = smov [#allocation12]   ;;  %s1475_s24 = scalar_lea.hbm %s2142_s3, 128 }
  0xa9   : > { %s430_s18 = sshll.u32 %s1673_s6, 4  ;;  %p1476_p12 = scmp.ne.s32.totalorder %s2142_s3, %s1475_s24  ;;  %s431_s18 = int_to_ptr.vmem [resolvable:$true] %s430_s18 }
  0xaa   : > { %p2203_p2 = scmp.ne.s32.totalorder %s2196_s28, 0  ;;  %p1482_p13 = scmp.lt.u32.totalorder %s1475_s24, %s1475_s24 }
  0xab   : > { %p1484_p5 = scmp.lt.u32.totalorder %s1475_s24, %s2142_s3 }
  0xac   : > { %p1478_p6 = pnand %p1476_p12, %p2203_p2 }
  0xad   : > { %p1485_p9 = por %p1484_p5, %p1482_p13 }
  0xae   : > { %p1479_p11 = pneg %p1478_p6 }
  0xb0   : > { %p1486_p0 = pnand %p1485_p9, %p1479_p11 }
  0xb2   : > { %1489 = shalt.err (!%p1486_p0)
}
  0xb3   : > { %s1490_s11 = scalar_lea.vmem %s431_s18, 128  ;;  %s1497_s9 = scalar_lea.vmem %s431_s18, 256 }
  0xb4   : > { %p1491_p8 = scmp.ne.s32.totalorder %s431_s18, %s1490_s11  ;;  %p1498_p4 = scmp.lt.s32.totalorder %s431_s18, %s431_s18 }
  0xb5   : > { %p1499_p3 = scmp.lt.s32.totalorder %s1497_s9, %s1490_s11 }
  0xb6   : > { %p1493_p10 = pnand %p1491_p8, %p2203_p2 }
  0xb7   : > { %p1500_p7 = por %p1499_p3, %p1498_p4 }
  0xb8   : > { %p1494_p1 = pneg %p1493_p10 }
  0xba   : > { %p1501_p12 = pnand %p1500_p7, %p1494_p1 }
  0xbc   : > { %1504 = shalt.err (!%p1501_p12)
}
  0xbd   : > { %p2204_p6 = scmp.ne.s32.totalorder %s2195_s21, 0  ;;  %s1505_s25 = scalar_lea.hbm %s2147_s8, 256 }
  0xbe   : > { %p1506_p11 = scmp.ne.s32.totalorder %s2147_s8, %s1505_s25  ;;  %p1512_p9 = scmp.lt.u32.totalorder %s1505_s25, %s1505_s25 }
  0xbf   : > { %1217 = dma.hbm_to_vmem [thread:$0]  (!%p2204_p6), %s2142_s3, 128, %s431_s18, %s1885_s27  }
  0xc0   : > { %p1508_p13 = pnand %p1506_p11, %p2203_p2  ;;  %p1514_p0 = scmp.lt.u32.totalorder %s1505_s25, %s2147_s8 }
  0xc2   : > { %p1509_p5 = pneg %p1508_p13  ;;  %p1515_p8 = por %p1514_p0, %p1512_p9 }
  0xc4   : > { %p1516_p10 = pnand %p1515_p8, %p1509_p5 }
  0xc6   : > { %1519 = shalt.err (!%p1516_p10)
}
  0xc7   : > { %s1520_s27 = scalar_lea.vmem %s1881_s12, 256  ;;  %s1527_s18 = scalar_lea.vmem %s1881_s12, 512 }
  0xc8   : > { %p1521_p1 = scmp.ne.s32.totalorder %s1881_s12, %s1520_s27  ;;  %p1528_p7 = scmp.lt.s32.totalorder %s1881_s12, %s1881_s12 }
  0xc9   : > { %p1529_p12 = scmp.lt.s32.totalorder %s1527_s18, %s1520_s27 }
  0xca   : > { %p1523_p4 = pnand %p1521_p1, %p2203_p2 }
  0xcb   : > { %p1530_p11 = por %p1529_p12, %p1528_p7 }
  0xcc   : > { %p1524_p3 = pneg %p1523_p4 }
  0xce   : > { %p1531_p13 = pnand %p1530_p11, %p1524_p3 }
  0xd0   : > { %1534 = shalt.err (!%p1531_p13)
}
  0xd1   : > { %s2205_s26 = smov 8   ;;  %s2206_s19 = smov 128  }
  0xd2   : > { %1223 = dma.hbm_to_vmem [thread:$0]  (!%p2204_p6), %s2147_s8, 256, %s1881_s12, %s1854_s29, %s2206_s19, %s2206_s19, %s2205_s26  }
  0xd3   : > { %p2207_p2 = scmp.ne.s32.totalorder %s2188_s23, 0 }
  0xd4   : > { %p2208_p5 = scmp.eq.s32.totalorder (!%p2207_p2), %s1767_s17, 0 }
  0xd5   : > { %499 = sbr.rel (%p2207_p2) target bundleno = 712 (0x2c8), region = 56 }
  0xdc   : > { %1600 = dma.done.wait (%p2208_p5), [#allocation8], 16   ;;  %p2209_p9 = pmov %p2208_p5 }
  0xdd   : > { %s505_s21 = sand.u32 1, %s1767_s17   ;;  %s507_s28 = sand.u32 1, %s1650_s13  }
  0xde   : > { %1602 = vsyncadd (%p2209_p9), [#allocation8], 4294967280  ;;  %s2014_s15 = sshll.u32 %s507_s28, 3  ;;  %s506_s14 = scalar_lea.sflag [#allocation6], %s505_s21 }
  0xdf   : > { %s509_s10 = scalar_lea.vmem [#allocation9], %s2014_s15  ;;  %p2210_p6 = scmp.ne.s32.totalorder %s2183_s20, 0 }
  0xe1   : > { %1604 = dma.done.wait (%p2210_p6), %s506_s14, 128  }
  0xe2   : > { %1606 = vsyncadd (%p2210_p6), %s506_s14, 4294967168  ;;  %s515_s23 = scalar_lea.sflag [#allocation11], %s505_s21  ;;  %s518_s29 = scalar_lea.vmem [#allocation10], %s2014_s15 }
  0xe3   : > { %1608 = dma.done.wait (%p2210_p6), %s515_s23, 256  }
  0xe4   : > { %1610 = vsyncadd (%p2210_p6), %s515_s23, 4294967040  ;;  %s527_s12 = scalar_lea.vmem [#allocation12], %s2014_s15  ;;  %p2211_p0 = pmov %p2208_p5 }
  0xe6   : > { %1612 = dma.done.wait (%p2211_p0), [#allocation14], 128   ;;  %p2212_p8 = pmov %p2211_p0 }
  0xe7   : > { %s540_s6 = scalar_lea.vmem [#allocation15], %s2014_s15 }
  0xe8   : > { %1614 = vsyncadd (%p2212_p8), [#allocation14], 4294967168 }
  0xe9   : > { %1616 = dma.done.wait (%p2210_p6), %s506_s14, 128  }
  0xea   : > { %1618 = vsyncadd (%p2210_p6), %s506_s14, 4294967168  ;;  %p2213_p10 = pmov %p2211_p0 }
  0xeb   : > { %p2214_p1 = pmov %p2211_p0 }
  0xec   : > { %1620 = dma.done.wait (%p2213_p10), [#allocation11], 256  }
  0xed   : > { %1622 = vsyncadd (%p2214_p1), [#allocation11], 4294967040  ;;  %s2040_s25 = sshll.u32 %s507_s28, 4 }
  0xee   : > { %s553_s22 = scalar_lea.vmem [#allocation17], %s2040_s25 }
  0xef   : > { %1624 = dma.done.wait (%p2210_p6), %s506_s14, 256  }
  0xf0   : > { %1626 = vsyncadd (%p2210_p6), %s506_s14, 4294967040 }
  0xf1   : > { %558 = sfence }
  0xf2   : > { %s2215_s24 = sld [smem:[#allocation28_spill]]  ;;  %s2216_s30 = sld [smem:[#allocation30_spill]]  ;;  %vm650_vm0 = vcmask 130048   ;;  %v1674_v0 = vmov 0.0  }
  0xf3   : > { %651 = vst.msk [vmem:[#allocation2] sm:$0xff] %vm650_vm0, %v1674_v0  ;;  %652 = vst [vmem:[#allocation3] sm:$0xff] %v1674_v0  ;;  %s2217_s11 = sld [smem:[#allocation36_spill]] }
  0xf4   : > { %653 = vst [vmem:[#allocation4] sm:$0xff] %v1674_v0  ;;  %654 = vst [vmem:[#allocation4 + $0x8] sm:$0xff] %v1674_v0 }
  0xf8   : > { %s614_s7 = sand.u32 1, %s2215_s24   ;;  %p630_p4 = scmp.lt.s32.totalorder %s2216_s30, 0 }
  0xf9   : > { %s2051_s17 = sshll.u32 %s614_s7, 3  ;;  %p1136_p7 = scmp.ge.s32.totalorder %s2216_s30, 1 }
  0xfa   : > { %s631_s20 = scalar_select %p630_p4, %s2216_s30, 0 }
  0xfb   : > { %s616_s21 = scalar_lea.vmem [#allocation18], %s2051_s17  ;;  %658 = sbr.rel (%p1136_p7) target bundleno = 478 (0x1de), region = 96  ;;  %v750_v1 = vld [vmem:[#allocation16] sm:$0xff] (!%p1136_p7)  ;;  %v751_v2 = vld [vmem:[#allocation16 + $0x8] sm:$0xff] (!%p1136_p7)  ;;  %v1675_v6 = vmov (!%p1136_p7), 0.0   ;;  %vm1676_vm1 = vmmov (!%p1136_p7), 0  }
  0xfc   : > { %s1134_s27 = sshll.u32 %s631_s20, 1  ;;  %v659_v3 = vld [vmem:[%s509_s10] sm:$0xff] (!%p1136_p7)  ;;  %v1164_v4 = vpack.c.bf16 (!%p1136_p7), %v751_v2, %v750_v1  ;;  %v660_v5 = vld [vmem:[%s518_s29] sm:$0xff] (!%p1136_p7)  ;;  %1152 = vmatprep.subr.mxu0 (!%p1136_p7), %v1675_v6  ;;  %1154 = vmatprep.mubr.msk.f32.mxu0 (!%p1136_p7), %vm1676_vm1, %v1675_v6  ;;  %vm669_vm2 = vcmask (!%p1136_p7), 64512   ;;  %v743_v15 = vld [vmem:[%s540_s6] sm:$0xff] (!%p1136_p7) }
  0xfd   : > { %p633_p3 = scmp.lt.s32.totalorder %s1134_s27, 1  ;;  %v668_v7 = vld [vmem:[#allocation13] sm:$0xff] (!%p1136_p7)  ;;  %v661_v8 = vsub.f32 (!%p1136_p7), %v659_v3, %v660_v5  ;;  %v667_v10 = vld [vmem:[%s527_s12] sm:$0xff] (!%p1136_p7)  ;;  %v838_v24 = vld [vmem:[#allocation4 + $0x8] sm:$0xff] (!%p1136_p7) }
  0xfe   : > { %1153 = vmatpush3.msra.mxu0 (!%p1136_p7), %v668_v7  ;;  %1165 = vmatprep.subr.bf16.mxu1 (!%p1136_p7), %v1164_v4  ;;  %v663_v11 = vld [vmem:[#allocation2] sm:$0xff] (!%p1136_p7)  ;;  %v745_v17 = vld [vmem:[#allocation3] sm:$0xff] (!%p1136_p7)  ;;  %v837_v27 = vld [vmem:[#allocation4] sm:$0xff] (!%p1136_p7) }
  0xff   : > { %s2236_s27 = smov (!%p633_p3, %s1134_s27), 1  ;;  %1167 = vmatpush3.bf16.msra.mxu1 (!%p1136_p7), %v1164_v4  ;;  %v662_v12 = vmul.f32 (!%p1136_p7), %v661_v8, %v661_v8  ;;  %1155 = vmatmul.mubr.msk.f32.vlgmr.msra.gmra.mrb[0].mxu0 (!%p1136_p7), %vm669_vm2, %v667_v10  ;;  %v834_v19 = vld [vmem:[%s553_s22 + $0x8] sm:$0xff] (!%p1136_p7)  ;;  %v833_v21 = vld [vmem:[%s553_s22] sm:$0xff] (!%p1136_p7) }
 0x100   : > { %s1135_s18 = sshll.u32 %s2236_s27, 3 }
 0x101   : > { %s636_s9 = scalar_lea.vmem %s2217_s11, %s1135_s18  ;;  %v664_v14 = vadd.f32 (!%p1136_p7), %v663_v11, %v662_v12 }
 0x102   : > { %v748_v9 = vld [vmem:[%s636_s9] sm:$0xff]  ;;  %v749_v13 = vld [vmem:[%s636_s9 + $0x8] sm:$0xff] }
 0x103   : > { %1161 = vmatprep.mubr.msk.f32.mxu1 %vm650_vm0, %v748_v9  ;;  %666 = vst.msk [vmem:[#allocation2] sm:$0xff] %vm650_vm0, %v664_v14 }
 0x104   : > { %1162 = vmatmul.mubr.msk.f32.vlgmr.msra.gmra.mrb[0].mxu1 %vm650_vm0, %v749_v13 }
 0x1d2   : > { %v739_v16 = vpop.f32.mrb[0].mxu0 }
 0x1d3   : > { %v744_v18 = vmul.f32 %v743_v15, %v739_v16  ;;  %v1156_v20 = vpop.f32.mrb[1].mxu0 }
 0x1d5   : > { %v746_v22 = vadd.f32 %v745_v17, %v744_v18 }
 0x1d7   : > { %v1163_v23 = vpop.f32.mrb[0].mxu1  ;;  %747 = vst [vmem:[#allocation3] sm:$0xff] %v746_v22 }
 0x1d8   : > { %v836_v25 = vmul.f32 %v1163_v23, %v834_v19  ;;  %v824_v26 = vpop.f32.mrb[1].mxu1 }
 0x1d9   : > { %v835_v28 = vmul.f32 %v833_v21, %v824_v26 }
 0x1da   : > { %v840_v29 = vadd.f32 %v838_v24, %v836_v25 }
 0x1db   : > { %v839_v30 = vadd.f32 %v837_v27, %v835_v28 }
 0x1dc   : > { %842 = vst [vmem:[#allocation4 + $0x8] sm:$0xff] %v840_v29 }
 0x1dd   : > { %841 = vst [vmem:[#allocation4] sm:$0xff] %v839_v30 }
 0x1de PF: > { %v846_v31 = vld [vmem:[#allocation2] sm:$0xff]  ;;  %v859_v36 = vld [vmem:[#allocation3] sm:$0xff]  ;;  %s2218_s28 = sld [smem:[#allocation30_spill]]  ;;  %s858_s14 = sld [smem:[#allocation5]] }
 0x1df   : > { %v848_v34 = vsel %vm650_vm0, %v846_v31, 0.0  ;;  %s1140_s10 = sld [smem:[#allocation5 + $0x1]]  ;;  %s2220_s29 = sld [smem:[#allocation32_spill]] }
 0x1e0   : > { %849 = vadd.xlane.f32.xlu0 %v848_v34  ;;  %s902_s24 = sshll.u32 %s616_s21, 4  ;;  %s2221_s19 = sld [smem:[#allocation38_spill]]  ;;  %s2084_s24 = int_to_ptr.vmem [resolvable:$true] %s902_s24 }
 0x1e1   : > { %s889_s9 = scalar_lea.sflag [#allocation7], %s614_s7 }
 0x1e3   : > { %v873_v33 = vld [vmem:[#allocation4 + $0x8] sm:$0xff] }
 0x1e4   : > { %v872_v32 = vld [vmem:[#allocation4] sm:$0xff]  ;;  %860 = vadd.xlane.f32.xlu0 %v859_v36  ;;  %s1142_s22 = sshll.u32 %s2218_s28, 7  ;;  %s1535_s28 = scalar_lea.vmem %s2084_s24, 128 }
 0x1e5   : > { %v874_v35 = vadd.f32 %v873_v33, %v872_v32  ;;  %p1536_p12 = scmp.ne.s32.totalorder %s2084_s24, %s1535_s28  ;;  %p2222_p11 = scmp.ne.s32.totalorder %s2220_s29, 0 }
 0x1e6   : > { %s2082_s11 = scalar_lea.hbm %s2221_s19, %s1142_s22 }
 0x1e7   : > { %875 = vadd.xlane.f32.xlu1 %v874_v35  ;;  %p1537_p13 = pnand %p1536_p12, %p2222_p11 }
 0x1e9   : > { %p1538_p2 = pneg %p1537_p13 }
 0x26d   : > { %v850_v37 = vpop.xlane.xlu0 %849 }
 0x26e   : > { %v851_v38 = vrot.slane %v850_v37, 4 }
 0x270   : > { %v852_v41 = vadd.f32 %v851_v38, %v850_v37 }
 0x271   : > { %v861_v43 = vpop.xlane.xlu0 %860 }
 0x272   : > { %v853_v44 = vrot.slane %v852_v41, 2  ;;  %v862_v45 = vrot.slane %v861_v43, 4 }
 0x274   : > { %v876_v39 = vpop.xlane.xlu1 %875  ;;  %v863_v47 = vadd.f32 %v862_v45, %v861_v43  ;;  %v854_v48 = vadd.f32 %v853_v44, %v852_v41 }
 0x275   : > { %v877_v40 = vrot.slane %v876_v39, 4 }
 0x276   : > { %v864_v50 = vrot.slane %v863_v47, 2  ;;  %v855_v51 = vrot.slane %v854_v48, 1 }
 0x277   : > { %v878_v42 = vadd.f32 %v877_v40, %v876_v39 }
 0x278   : > { %v865_v52 = vadd.f32 %v864_v50, %v863_v47  ;;  %v856_v53 = vadd.f32 %v855_v51, %v854_v48 }
 0x279   : > { %v879_v46 = vrot.slane %v878_v42, 2 }
 0x27a   : > { %1168 = vpush %v856_v53  ;;  %v866_v55 = vrot.slane %v865_v52, 1 }
 0x27b   : > { %v880_v49 = vadd.f32 %v879_v46, %v878_v42 }
 0x27c   : > { %v867_v56 = vadd.f32 %v866_v55, %v865_v52 }
 0x27d   : > { %v881_v54 = vrot.slane %v880_v49, 1 }
 0x27e   : > { %1170 = vpush %v867_v56 }
 0x27f   : > { %v882_v57 = vadd.f32 %v881_v54, %v880_v49 }
 0x281   : > { %1172 = vpush %v882_v57 }
 0x2ab   : > { %s1169_s23 = spop %1168 }
 0x2af   : > { %s1171_s12 = spop %1170 }
 0x2b0   : > { %s869_s6 = smul.f32 %s1171_s12, %s858_s14  ;;  %s1677_s14 = smov [#allocation18]  }
 0x2b2   : > { %s1173_s25 = spop %1172  ;;  %s870_s30 = sadd.f32 %s1169_s23, %s869_s6 }
 0x2b3   : > { %s884_s20 = smul.f32 %s1173_s25, %s1140_s10  ;;  %s1539_s10 = sshll.u32 %s1677_s14, 4  ;;  %s1540_s10 = int_to_ptr.vmem [resolvable:$false] %s1539_s10 }
 0x2b4   : > { %s1541_s23 = scalar_lea.vmem %s1540_s10, 256  ;;  %p1542_p5 = scmp.lt.s32.totalorder %s2084_s24, %s1540_s10 }
 0x2b5   : > { %s885_s27 = sadd.f32 %s884_s20, %s870_s30  ;;  %p1543_p9 = scmp.lt.s32.totalorder %s1541_s23, %s1535_s28 }
 0x2b7   : > { %v886_v58 = vstv %s885_s27  ;;  %p1544_p6 = por %p1543_p9, %p1542_p5 }
 0x2b8   : > { %887 = vst [vmem:[%s616_s21] sm:$0xff] %v886_v58 }
 0x2b9   : > { %p1545_p0 = pnand %p1544_p6, %p1538_p2 }
 0x2bb   : > { %1548 = shalt.err (!%p1545_p0)
}
 0x2bc   : > { %s1549_s7 = scalar_lea.hbm %s2082_s11, 128  ;;  %s1553_s15 = scalar_lea.hbm %s2221_s19, 256 }
 0x2bd   : > { %p1550_p8 = scmp.ne.s32.totalorder %s2082_s11, %s1549_s7  ;;  %p1554_p4 = scmp.lt.u32.totalorder %s2082_s11, %s2221_s19 }
 0x2be   : > { %p1555_p3 = scmp.lt.u32.totalorder %s1553_s15, %s1549_s7  ;;  %p1557_p12 = scmp.lt.u32.totalorder %s1549_s7, %s2082_s11 }
 0x2bf   : > { %p1551_p10 = pnand %p1550_p8, %p2222_p11 }
 0x2c0   : > { %p1556_p7 = por %p1555_p3, %p1554_p4 }
 0x2c1   : > { %p1552_p1 = pneg %p1551_p10 }
 0x2c2   : > { %p1558_p13 = por %p1557_p12, %p1556_p7 }
 0x2c4   : > { %p1559_p2 = pnand %p1558_p13, %p1552_p1 }
 0x2c6   : > { %1562 = shalt.err (!%p1559_p2)
}
 0x2c7   : > { %1196 = dma.vmem_to_hbm [thread:$0]  (%p2222_p11), %s2084_s24, 128, %s2082_s11, %s889_s9  }
 0x2c8 PF: > { %s2223_s25 = sld [smem:[#allocation27_spill]]  ;;  %s2224_s22 = sld [smem:[#allocation33_spill]] }
 0x2c9   : > { %p2226_p9 = scmp.ge.s32.totalorder %s1662_s16, 2 }
 0x2ce   : > { %s914_s30 = sand.u32 1, %s2223_s25   ;;  %p2225_p5 = scmp.ne.s32.totalorder %s2224_s22, 0 }
 0x2cf   : > { %s915_s20 = scalar_lea.sflag [#allocation7], %s914_s30 }
 0x2d0   : > { %p1225_p6 = pnand %p2226_p9, %p2225_p5 }
 0x2d2   : > { %1628 = dma.done.wait (!%p1225_p6), %s915_s20, 128  }
 0x2d3   : > { %1630 = vsyncadd (!%p1225_p6), %s915_s20, 4294967168  ;;  %s30_s16 = sadd.s32 1, %s1662_s16   ;;  %s2227_s30 = sld [smem:[#allocation28_spill]] }
 0x2d4   : > { %p27_p0 = scmp.ge.s32.totalorder %s30_s16, 4   ;;  %s2228_s10 = sld [smem:[#allocation29_spill]] }
 0x2d5   : > { %s2229_s11 = sld [smem:[#allocation35_spill]]  ;;  %s2230_s14 = sld [smem:[#allocation31_spill]] }
 0x2d6   : > { %s2231_s15 = sld [smem:[#allocation34_spill]]  ;;  %s2232_s12 = smov %s1650_s13 }
 0x2d7   : > { %s2129_s13 = smov 0   ;;  %29 = sbr.rel (!%p27_p0) target bundleno = 15 (0xf), region = 175 }
 0x2de   :  { %920 = vsyncpa [#allocation6], 1 }
 0x2df   :  { %922 = vsyncpa [#allocation6 + $0x1], 1 }
 0x2e0   :  { %923 = vsyncpa [#allocation11], 1 }
 0x2e1   :  { %925 = vsyncpa [#allocation11 + $0x1], 1 }
 0x2e2   :  { %926 = vsyncpa [#allocation14], 1 }
 0x2e3   :  { %927 = vsyncpa [#allocation7], 1 }
 0x2e4   :  { %929 = vsyncpa [#allocation7 + $0x1], 1 }
 0x2e5   :  { %930 = vsyncpa [#allocation8], 1 }
 0x2e6   :  { %932 = vsyncpa [#allocation8 + $0x1], 1 }

</bundles_post_ra>
